<compile_context>
chip_gen: v6e
topology: v6e:2x2x1
jax: 0.10.0
libtpu: 0.0.40
codegen_flags: <defaults>
</compile_context>

<pallas_src>
import jax
import jax.numpy as jnp
from jax.experimental import pallas as pl
from jax.experimental.pallas import tpu as pltpu


# ---------------------------------------------------------------------------
# Small helpers
# ---------------------------------------------------------------------------
def _round_up(x, m):
    return ((x + m - 1) // m) * m


def _pad2(x, rows, cols):
    return jnp.pad(x, ((0, rows - x.shape[0]), (0, cols - x.shape[1])))


def _vmem_capacity_bytes():
    """Physical VMEM per TensorCore; conservative fallback if the query fails."""
    try:
        return int(pltpu.get_tpu_info().vmem_capacity_bytes)
    except Exception:
        return 64 * 1024 * 1024          # v7x floor; v5e/v6e have 128 MiB


def _fused_vmem_estimate(n_pad, pad_w, hid_pad):
    """Rough VMEM footprint (bytes) of the fully-resident fused kernel."""
    num_layers = len(pad_w) - 1
    max_w = max(pad_w)
    weights = sum(pad_w[i] * pad_w[i + 1] * 2 + pad_w[i + 1] * 4
                  for i in range(num_layers))
    weights += hid_pad * pad_w[-1] * 2 + pad_w[-1] * 4
    io = n_pad * n_pad * 2 + n_pad * pad_w[0] * 4 + weights + n_pad * pad_w[-1] * 4
    acts = 4 * n_pad * max_w * 4         # live f32 slabs: h, h_new, temps, broadcasts
    return 2 * io + acts                 # x2: Pallas I/O buffer headroom


# ---------------------------------------------------------------------------
# Path 1: fused, fully-VMEM-resident kernel (small graphs)
# ---------------------------------------------------------------------------
def make_fused_graph_encoder_kernel(num_layers, true_widths, pad_widths):
    """Fused forward: degree norm + every GraphConv + bias + skip mix + ReLU.

    Ref order: adj, h0, (w_i, b_i) * num_layers, skip_w, skip_b, out.
    true_widths drive the skip-mix branch (module semantics);
    pad_widths drive the cheaper matmul ordering (hardware cost).
    """

    def kernel(adj_ref, h_ref, *refs):
        out_ref = refs[-1]
        sb_ref = refs[-2]
        sw_ref = refs[-3]
        wb_refs = refs[: 2 * num_layers]

        a_bf = adj_ref[...]                                   # (Np, Np) bf16, 0/1 exact
        n_p = a_bf.shape[0]

        # Degrees via an MXU matvec: no f32 copy of A, no XLU lane reduction.
        # Counting 0/1 entries in bf16 with f32 accumulation is exact.
        ones = jnp.ones((n_p, 128), jnp.bfloat16)
        deg = jnp.dot(a_bf, ones, preferred_element_type=jnp.float32)[:, 0:1]
        inv_d = jax.lax.rsqrt(jnp.maximum(deg, 1.0))          # (Np, 1) f32

        # Hoist the (Np,1)->(Np,W) broadcasts out of the unrolled layer loop
        # (JAX does not CSE broadcast_in_dim).
        widths = set()
        for i in range(num_layers):
            f_in_p, f_out_p = pad_widths[i], pad_widths[i + 1]
            widths.add(f_in_p if f_out_p > f_in_p else f_out_p)
        inv_d_b = {w: jnp.broadcast_to(inv_d, (n_p, w)) for w in sorted(widths)}

        h = h_ref[...].astype(jnp.float32)
        for i in range(num_layers):
            w_ref = wb_refs[2 * i]            # bf16 (pre-cast in wrapper)
            b_ref = wb_refs[2 * i + 1]        # f32
            f_in_p, f_out_p = pad_widths[i], pad_widths[i + 1]

            if f_out_p > f_in_p:
                # Padded-widening layer: aggregate first (N^2 * f_in_p), then project.
                hs = (inv_d_b[f_in_p] * h).astype(jnp.bfloat16)
                agg = inv_d_b[f_in_p] * jnp.dot(
                    a_bf, hs, preferred_element_type=jnp.float32)
                gcn = jnp.dot(agg.astype(jnp.bfloat16), w_ref[...],
                              preferred_element_type=jnp.float32) + b_ref[...]
            else:
                # Narrowing / same padded width: project first, then aggregate.
                hw = jnp.dot(h.astype(jnp.bfloat16), w_ref[...],
                             preferred_element_type=jnp.float32)
                hws = (inv_d_b[f_out_p] * hw).astype(jnp.bfloat16)
                gcn = inv_d_b[f_out_p] * jnp.dot(
                    a_bf, hws, preferred_element_type=jnp.float32) + b_ref[...]

            # Skip-mix branch follows the TRUE (unpadded) widths.
            if i == 0:
                h_new = gcn
            elif true_widths[i] == true_widths[i + 1]:
                h_new = 0.6 * h + 0.4 * gcn
            else:
                skip = jnp.dot(h.astype(jnp.bfloat16), sw_ref[...],
                               preferred_element_type=jnp.float32) + sb_ref[...]
                h_new = 0.6 * skip + 0.4 * gcn

            if i < num_layers - 1:            # ReLU on all but the last layer
                h_new = jnp.maximum(h_new, 0.0)
            h = h_new

        out_ref[...] = h.astype(out_ref.dtype)

    return kernel


def _fused_forward(adj_bf, h_p, layers_p, sw_bf, sb_p, true_widths, pad_w,
                   hid_pad, vmem_cap):
    num_layers = len(layers_p)
    n_pad = adj_bf.shape[0]

    flat = []
    for w_bf, b in layers_p:
        flat += [w_bf, b]
    flat += [sw_bf, sb_p]

    flops = 2 * n_pad * n_pad * 128                        # degree matvec
    bytes_acc = n_pad * n_pad * 2 + n_pad * pad_w[0] * 4 + n_pad * pad_w[-1] * 4
    for i in range(num_layers):
        fi, fo = pad_w[i], pad_w[i + 1]
        flops += 2 * n_pad * n_pad * min(fi, fo) + 2 * n_pad * fi * fo
        bytes_acc += fi * fo * 2 + fo * 4
    flops += 2 * n_pad * hid_pad * pad_w[-1]               # skip projection
    bytes_acc += hid_pad * pad_w[-1] * 2 + pad_w[-1] * 4

    vmem_need = _fused_vmem_estimate(n_pad, pad_w, hid_pad)
    vmem_limit = int(min(0.9 * vmem_cap, max(2 * vmem_need, 32 * 1024 * 1024)))

    kernel = make_fused_graph_encoder_kernel(num_layers, true_widths, pad_w)
    return pl.pallas_call(
        kernel,
        out_shape=jax.ShapeDtypeStruct((n_pad, pad_w[-1]), jnp.float32),
        # Gridless: the whole padded problem is VMEM-resident -> one HBM read
        # of A, one lane-dense HBM write of the output.
        compiler_params=pltpu.CompilerParams(vmem_limit_bytes=vmem_limit),
        cost_estimate=pl.CostEstimate(flops=flops, transcendentals=n_pad,
                                      bytes_accessed=bytes_acc),
    )(adj_bf, h_p, *flat)


# ---------------------------------------------------------------------------
# Path 2: per-layer row-tiled aggregation (large graphs; megacore "parallel")
# ---------------------------------------------------------------------------
def _make_rowtiled_layer_kernel(gcn_coef, do_relu):
    """out_block = mix_block + gcn_coef * (inv_d_block * (A_block @ z) + bias)."""

    def kernel(a_ref, z_ref, d_ref, b_ref, m_ref, o_ref):
        agg = jnp.dot(a_ref[...], z_ref[...], preferred_element_type=jnp.float32)
        h_new = m_ref[...] + gcn_coef * (d_ref[...] * agg + b_ref[...])
        if do_relu:
            h_new = jnp.maximum(h_new, 0.0)
        o_ref[...] = h_new

    return kernel


def _rowtiled_gcn_layer(adj_bf, z_bf, inv_d, bias, mix, gcn_coef, do_relu,
                        tm, vmem_cap):
    n_p = adj_bf.shape[0]
    f = z_bf.shape[1]
    grid = (n_p // tm,)

    vmem_need = (2 * tm * n_p * 2          # double-buffered A row blocks (bf16)
                 + 2 * n_p * f * 2         # resident z (bf16)
                 + 2 * tm * f * 4 * 2      # mix + out blocks (f32)
                 + 2 * (tm + f) * 4
                 + (4 << 20))
    vmem_limit = int(min(0.9 * vmem_cap, max(vmem_need, 32 * 1024 * 1024)))

    return pl.pallas_call(
        _make_rowtiled_layer_kernel(gcn_coef, do_relu),
        out_shape=jax.ShapeDtypeStruct((n_p, f), jnp.float32),
        grid=grid,
        in_specs=[
            pl.BlockSpec((tm, n_p), lambda i: (i, 0)),    # A row-block (pipelined)
            pl.BlockSpec((n_p, f), lambda i: (0, 0)),     # z, resident across grid
            pl.BlockSpec((tm, 1), lambda i: (i, 0)),      # inv_d row-block
            pl.BlockSpec((1, f), lambda i: (0, 0)),       # bias
            pl.BlockSpec((tm, f), lambda i: (i, 0)),      # skip-mix row-block
        ],
        out_specs=pl.BlockSpec((tm, f), lambda i: (i, 0)),
        compiler_params=pltpu.CompilerParams(
            dimension_semantics=("parallel",),            # megacore sharding on v7x
            vmem_limit_bytes=vmem_limit,
        ),
        cost_estimate=pl.CostEstimate(
            flops=2 * n_p * n_p * f, transcendentals=0,
            bytes_accessed=n_p * n_p * 2 + n_p * f * (2 + 4 + 4) + n_p * 4 + f * 4),
    )(adj_bf, z_bf, inv_d, bias, mix)


def _rowtiled_forward(adj_bf, h0, layers_p, sw_bf, sb_p, true_widths, pad_w,
                      tm, vmem_cap):
    n_p = adj_bf.shape[0]
    num_layers = len(layers_p)

    # Degrees / inv_d precomputed once (exact: 0/1 entries, f32 accumulation).
    deg = jnp.sum(adj_bf, axis=1, dtype=jnp.float32, keepdims=True)
    inv_d = jax.lax.rsqrt(jnp.maximum(deg, 1.0))           # (Np, 1) f32

    h = h0
    for i, (w_bf, b) in enumerate(layers_p):
        f_out_p = pad_w[i + 1]
        # Project first in plain XLA (O(N F^2)); the Pallas row-tiled call then
        # handles the dominant O(N^2 F) aggregation with pipelined A tiles.
        # TODO(synk): aggregate-first variant for padded-widening layers.
        hw = jnp.dot(h.astype(jnp.bfloat16), w_bf,
                     preferred_element_type=jnp.float32)
        z_bf = (inv_d * hw).astype(jnp.bfloat16)

        if i == 0:
            mix = jnp.zeros((n_p, f_out_p), jnp.float32)
            coef = 1.0
        elif true_widths[i] == true_widths[i + 1]:
            mix = 0.6 * h
            coef = 0.4
        else:
            skip = jnp.dot(h.astype(jnp.bfloat16), sw_bf,
                           preferred_element_type=jnp.float32) + sb_p
            mix = 0.6 * skip
            coef = 0.4

        h = _rowtiled_gcn_layer(adj_bf, z_bf, inv_d, b, mix, coef,
                                i < num_layers - 1, tm, vmem_cap)
    return h


# ---------------------------------------------------------------------------
# Top-level wrapper (padding, dtype prep, path selection)
# ---------------------------------------------------------------------------
def graph_encoder_forward(adj, node_feats, params, *, force_row_tiled=False,
                          row_tile=128):
    """Mirrors GraphEncoder.forward (graph given as dense symmetric 0/1 adjacency)."""
    layers = params["layers"]
    sw, sb = params["skip_proj"]
    n = adj.shape[0]
    true_widths = [node_feats.shape[1]] + [w.shape[1] for (w, _) in layers]
    out_size = true_widths[-1]

    # Lane-dense padding: feature widths to 128; N to 128 (256 once large enough
    # that full 256x256 MXU tiles on v6e/v7x are worth the extra padded rows).
    n_pad = _round_up(n, 256 if n >= 2048 else 128)
    pad_w = [_round_up(d, 128) for d in true_widths]
    hid_pad = _round_up(sw.shape[0], 128)

    adj_bf = _pad2(adj.astype(jnp.float32), n_pad, n_pad).astype(jnp.bfloat16)
    h_p = _pad2(node_feats, n_pad, pad_w[0]).astype(jnp.float32)

    layers_p = [(_pad2(w, pad_w[i], pad_w[i + 1]).astype(jnp.bfloat16),  # weights bf16
                 _pad2(b, 1, pad_w[i + 1]).astype(jnp.float32))          # biases  f32
                for i, (w, b) in enumerate(layers)]
    sw_bf = _pad2(sw, hid_pad, pad_w[-1]).astype(jnp.bfloat16)
    sb_p = _pad2(sb, 1, pad_w[-1]).astype(jnp.float32)

    vmem_cap = _vmem_capacity_bytes()
    fused_fits = _fused_vmem_estimate(n_pad, pad_w, hid_pad) <= int(0.75 * vmem_cap)

    if fused_fits and not force_row_tiled:
        out = _fused_forward(adj_bf, h_p, layers_p, sw_bf, sb_p,
                             true_widths, pad_w, hid_pad, vmem_cap)
    else:
        out = _rowtiled_forward(adj_bf, h_p, layers_p, sw_bf, sb_p,
                                true_widths, pad_w, row_tile, vmem_cap)

    return out[None, :n, :out_size]            # unsqueeze(0) + strip padding


# ---------------------------------------------------------------------------
# Pure-JAX reference (correctness check)
# ---------------------------------------------------------------------------
def graph_encoder_reference(adj, node_feats, params):
    deg = jnp.maximum(jnp.sum(adj, axis=1), 1.0)
    inv_d = 1.0 / jnp.sqrt(deg)
    a_norm = inv_d[:, None] * adj * inv_d[None, :]
    sw, sb = params["skip_proj"]
    layers = params["layers"]
    last = len(layers) - 1
    h = node_feats
    for i, (w, b) in enumerate(layers):
        gcn = a_norm @ (h @ w) + b
        if i == 0:
            h = gcn
        elif h.shape[1] == gcn.shape[1]:
            h = 0.6 * h + 0.4 * gcn
        else:
            h = 0.6 * (h @ sw + sb) + 0.4 * gcn
        if i < last:
            h = jnp.maximum(h, 0.0)
    return h[None]


# ---------------------------------------------------------------------------
# Deterministic parameter / input construction
# ---------------------------------------------------------------------------
def init_params(key, in_feat, n_layers, hidden_size, out_size):
    dims = [in_feat] + [hidden_size] * (n_layers - 1) + [out_size]
    layers = []
    for li in range(n_layers):
        kw, kb, key = jax.random.split(key, 3)
        w = 0.1 * jax.random.normal(kw, (dims[li], dims[li + 1]), jnp.float32)
        b = 0.1 * jax.random.normal(kb, (1, dims[li + 1]), jnp.float32)
        layers.append((w, b))
    kw, kb, key = jax.random.split(key, 3)
    sw = 0.1 * jax.random.normal(kw, (hidden_size, out_size), jnp.float32)
    sb = 0.1 * jax.random.normal(kb, (1, out_size), jnp.float32)
    return {"layers": layers, "skip_proj": (sw, sb)}


def make_problem(key, n_nodes, in_feat, n_layers, hidden, out):
    k_adj, k_feat, k_param = jax.random.split(key, 3)
    a = (jax.random.uniform(k_adj, (n_nodes, n_nodes)) < 0.3).astype(jnp.float32)
    adj = jnp.maximum(a, a.T) * (1.0 - jnp.eye(n_nodes, dtype=jnp.float32))
    feats = jax.random.normal(k_feat, (n_nodes, in_feat), jnp.float32)
    params = init_params(k_param, in_feat, n_layers, hidden, out)
    return adj, feats, params


if __name__ == "__main__":
    IN_FEAT, N_LAYERS, HIDDEN, OUT = 8, 3, 32, 16
    key = jax.random.PRNGKey(0)
    k1, k2 = jax.random.split(key)

    # 1) Small graph -> fused, fully-VMEM-resident path.
    adj, feats, params = make_problem(k1, 16, IN_FEAT, N_LAYERS, HIDDEN, OUT)
    out = jax.block_until_ready(graph_encoder_forward(adj, feats, params))
    ref = graph_encoder_reference(adj, feats, params)
    assert out.shape == (1, 16, OUT), out.shape
    assert out.dtype == jnp.float32
    assert bool(jnp.all(jnp.isfinite(out)))
    # Loose tolerance: matmuls run in bf16 with f32 accumulation.
    assert bool(jnp.all(jnp.abs(out - ref) <= 5e-2 + 5e-2 * jnp.abs(ref)))

    # 2) Larger graph, forced onto the row-tiled / megacore-parallel path
    #    (exercises BlockSpec pipelining of A row-blocks and "parallel" grid).
    adj2, feats2, params2 = make_problem(k2, 200, IN_FEAT, N_LAYERS, HIDDEN, OUT)
    out2 = jax.block_until_ready(
        graph_encoder_forward(adj2, feats2, params2, force_row_tiled=True))
    ref2 = graph_encoder_reference(adj2, feats2, params2)
    assert out2.shape == (1, 200, OUT), out2.shape
    assert out2.dtype == jnp.float32
    assert bool(jnp.all(jnp.isfinite(out2)))
    assert bool(jnp.all(jnp.abs(out2 - ref2) <= 5e-2 + 5e-2 * jnp.abs(ref2)))

    print("KERNEL_OK")
</pallas_src>

<mosaic_0001>
module attributes {stable_mosaic.version = 11 : i64} {
  func.func @kernel(%arg0: memref<128x128xbf16, #tpu.memory_space<vmem>>, %arg1: memref<128x128xf32, #tpu.memory_space<vmem>>, %arg2: memref<128x128xbf16, #tpu.memory_space<vmem>>, %arg3: memref<1x128xf32, #tpu.memory_space<vmem>>, %arg4: memref<128x128xbf16, #tpu.memory_space<vmem>>, %arg5: memref<1x128xf32, #tpu.memory_space<vmem>>, %arg6: memref<128x128xbf16, #tpu.memory_space<vmem>>, %arg7: memref<1x128xf32, #tpu.memory_space<vmem>>, %arg8: memref<128x128xbf16, #tpu.memory_space<vmem>>, %arg9: memref<1x128xf32, #tpu.memory_space<vmem>>, %arg10: memref<128x128xf32, #tpu.memory_space<vmem>>) attributes {dimension_semantics = [], scalar_prefetch = 0 : i64, scratch_operands = 0 : i64, tpu.core_type = #tpu.core_type<tc>} {
    %c0 = arith.constant 0 : index
    %c0_0 = arith.constant 0 : index
    %0 = vector.load %arg0[%c0, %c0_0] : memref<128x128xbf16, #tpu.memory_space<vmem>>, vector<128x128xbf16>
    %cst = arith.constant 1.000000e+00 : bf16
    %1 = vector.broadcast %cst : bf16 to vector<128x128xbf16>
    %cst_1 = arith.constant dense<0.000000e+00> : vector<128x128xf32>
    %2 = tpu.matmul %0, %1, %cst_1 {dimension_numbers = #tpu.dot_dimension_numbers<[1], [0], [0], [1], [0, 0, 1, 1], [], []>} : vector<128x128xbf16>, vector<128x128xbf16>, vector<128x128xf32> -> vector<128x128xf32>
    %3 = vector.extract_strided_slice %2 {offsets = [0, 0], sizes = [128, 1], strides = [1, 1]} : vector<128x128xf32> to vector<128x1xf32>
    %cst_2 = arith.constant 1.000000e+00 : f32
    %4 = vector.broadcast %cst_2 : f32 to vector<128x1xf32>
    %5 = arith.maximumf %3, %4 : vector<128x1xf32>
    %6 = math.rsqrt %5 : vector<128x1xf32>
    %7 = vector.shape_cast %6 : vector<128x1xf32> to vector<128x1xf32>
    %8 = vector.broadcast %7 : vector<128x1xf32> to vector<128x128xf32>
    %c0_3 = arith.constant 0 : index
    %c0_4 = arith.constant 0 : index
    %9 = vector.load %arg1[%c0_3, %c0_4] : memref<128x128xf32, #tpu.memory_space<vmem>>, vector<128x128xf32>
    %10 = arith.truncf %9 : vector<128x128xf32> to vector<128x128xbf16>
    %c0_5 = arith.constant 0 : index
    %c0_6 = arith.constant 0 : index
    %11 = vector.load %arg2[%c0_5, %c0_6] : memref<128x128xbf16, #tpu.memory_space<vmem>>, vector<128x128xbf16>
    %cst_7 = arith.constant dense<0.000000e+00> : vector<128x128xf32>
    %12 = tpu.matmul %10, %11, %cst_7 {dimension_numbers = #tpu.dot_dimension_numbers<[1], [0], [0], [1], [0, 0, 1, 1], [], []>} : vector<128x128xbf16>, vector<128x128xbf16>, vector<128x128xf32> -> vector<128x128xf32>
    %13 = arith.mulf %8, %12 : vector<128x128xf32>
    %14 = arith.truncf %13 : vector<128x128xf32> to vector<128x128xbf16>
    %cst_8 = arith.constant dense<0.000000e+00> : vector<128x128xf32>
    %15 = tpu.matmul %0, %14, %cst_8 {dimension_numbers = #tpu.dot_dimension_numbers<[1], [0], [0], [1], [0, 0, 1, 1], [], []>} : vector<128x128xbf16>, vector<128x128xbf16>, vector<128x128xf32> -> vector<128x128xf32>
    %16 = arith.mulf %8, %15 : vector<128x128xf32>
    %c0_9 = arith.constant 0 : index
    %c0_10 = arith.constant 0 : index
    %17 = vector.load %arg3[%c0_9, %c0_10] : memref<1x128xf32, #tpu.memory_space<vmem>>, vector<1x128xf32>
    %18 = vector.broadcast %17 : vector<1x128xf32> to vector<128x128xf32>
    %19 = arith.addf %16, %18 : vector<128x128xf32>
    %cst_11 = arith.constant 0.000000e+00 : f32
    %20 = vector.broadcast %cst_11 : f32 to vector<128x128xf32>
    %21 = arith.maximumf %19, %20 : vector<128x128xf32>
    %22 = arith.truncf %21 : vector<128x128xf32> to vector<128x128xbf16>
    %c0_12 = arith.constant 0 : index
    %c0_13 = arith.constant 0 : index
    %23 = vector.load %arg4[%c0_12, %c0_13] : memref<128x128xbf16, #tpu.memory_space<vmem>>, vector<128x128xbf16>
    %cst_14 = arith.constant dense<0.000000e+00> : vector<128x128xf32>
    %24 = tpu.matmul %22, %23, %cst_14 {dimension_numbers = #tpu.dot_dimension_numbers<[1], [0], [0], [1], [0, 0, 1, 1], [], []>} : vector<128x128xbf16>, vector<128x128xbf16>, vector<128x128xf32> -> vector<128x128xf32>
    %25 = arith.mulf %8, %24 : vector<128x128xf32>
    %26 = arith.truncf %25 : vector<128x128xf32> to vector<128x128xbf16>
    %cst_15 = arith.constant dense<0.000000e+00> : vector<128x128xf32>
    %27 = tpu.matmul %0, %26, %cst_15 {dimension_numbers = #tpu.dot_dimension_numbers<[1], [0], [0], [1], [0, 0, 1, 1], [], []>} : vector<128x128xbf16>, vector<128x128xbf16>, vector<128x128xf32> -> vector<128x128xf32>
    %28 = arith.mulf %8, %27 : vector<128x128xf32>
    %c0_16 = arith.constant 0 : index
    %c0_17 = arith.constant 0 : index
    %29 = vector.load %arg5[%c0_16, %c0_17] : memref<1x128xf32, #tpu.memory_space<vmem>>, vector<1x128xf32>
    %30 = vector.broadcast %29 : vector<1x128xf32> to vector<128x128xf32>
    %31 = arith.addf %28, %30 : vector<128x128xf32>
    %cst_18 = arith.constant 6.000000e-01 : f32
    %32 = vector.broadcast %cst_18 : f32 to vector<128x128xf32>
    %33 = arith.mulf %32, %21 : vector<128x128xf32>
    %cst_19 = arith.constant 4.000000e-01 : f32
    %34 = vector.broadcast %cst_19 : f32 to vector<128x128xf32>
    %35 = arith.mulf %34, %31 : vector<128x128xf32>
    %36 = arith.addf %33, %35 : vector<128x128xf32>
    %cst_20 = arith.constant 0.000000e+00 : f32
    %37 = vector.broadcast %cst_20 : f32 to vector<128x128xf32>
    %38 = arith.maximumf %36, %37 : vector<128x128xf32>
    %39 = arith.truncf %38 : vector<128x128xf32> to vector<128x128xbf16>
    %c0_21 = arith.constant 0 : index
    %c0_22 = arith.constant 0 : index
    %40 = vector.load %arg6[%c0_21, %c0_22] : memref<128x128xbf16, #tpu.memory_space<vmem>>, vector<128x128xbf16>
    %cst_23 = arith.constant dense<0.000000e+00> : vector<128x128xf32>
    %41 = tpu.matmul %39, %40, %cst_23 {dimension_numbers = #tpu.dot_dimension_numbers<[1], [0], [0], [1], [0, 0, 1, 1], [], []>} : vector<128x128xbf16>, vector<128x128xbf16>, vector<128x128xf32> -> vector<128x128xf32>
    %42 = arith.mulf %8, %41 : vector<128x128xf32>
    %43 = arith.truncf %42 : vector<128x128xf32> to vector<128x128xbf16>
    %cst_24 = arith.constant dense<0.000000e+00> : vector<128x128xf32>
    %44 = tpu.matmul %0, %43, %cst_24 {dimension_numbers = #tpu.dot_dimension_numbers<[1], [0], [0], [1], [0, 0, 1, 1], [], []>} : vector<128x128xbf16>, vector<128x128xbf16>, vector<128x128xf32> -> vector<128x128xf32>
    %45 = arith.mulf %8, %44 : vector<128x128xf32>
    %c0_25 = arith.constant 0 : index
    %c0_26 = arith.constant 0 : index
    %46 = vector.load %arg7[%c0_25, %c0_26] : memref<1x128xf32, #tpu.memory_space<vmem>>, vector<1x128xf32>
    %47 = vector.broadcast %46 : vector<1x128xf32> to vector<128x128xf32>
    %48 = arith.addf %45, %47 : vector<128x128xf32>
    %49 = arith.truncf %38 : vector<128x128xf32> to vector<128x128xbf16>
    %c0_27 = arith.constant 0 : index
    %c0_28 = arith.constant 0 : index
    %50 = vector.load %arg8[%c0_27, %c0_28] : memref<128x128xbf16, #tpu.memory_space<vmem>>, vector<128x128xbf16>
    %cst_29 = arith.constant dense<0.000000e+00> : vector<128x128xf32>
    %51 = tpu.matmul %49, %50, %cst_29 {dimension_numbers = #tpu.dot_dimension_numbers<[1], [0], [0], [1], [0, 0, 1, 1], [], []>} : vector<128x128xbf16>, vector<128x128xbf16>, vector<128x128xf32> -> vector<128x128xf32>
    %c0_30 = arith.constant 0 : index
    %c0_31 = arith.constant 0 : index
    %52 = vector.load %arg9[%c0_30, %c0_31] : memref<1x128xf32, #tpu.memory_space<vmem>>, vector<1x128xf32>
    %53 = vector.broadcast %52 : vector<1x128xf32> to vector<128x128xf32>
    %54 = arith.addf %51, %53 : vector<128x128xf32>
    %cst_32 = arith.constant 6.000000e-01 : f32
    %55 = vector.broadcast %cst_32 : f32 to vector<128x128xf32>
    %56 = arith.mulf %55, %54 : vector<128x128xf32>
    %cst_33 = arith.constant 4.000000e-01 : f32
    %57 = vector.broadcast %cst_33 : f32 to vector<128x128xf32>
    %58 = arith.mulf %57, %48 : vector<128x128xf32>
    %59 = arith.addf %56, %58 : vector<128x128xf32>
    %c0_34 = arith.constant 0 : index
    %c0_35 = arith.constant 0 : index
    %60 = vector.load %arg10[%c0_34, %c0_35] : memref<128x128xf32, #tpu.memory_space<vmem>>, vector<128x128xf32>
    tpu.vector_store %arg10[%c0_34, %c0_35], %59 {strides = array<i32>} : memref<128x128xf32, #tpu.memory_space<vmem>>, vector<128x128xf32>,
    return
  }
}

</mosaic_0001>

<bundles_post_ra>
// kernel: tpu_custom_call.1
= control target key start
LH: loop header
LB: loop body
LE: loop exit
PB: predicated region body
PF: predicated region fallthrough
CT: control target
= control target key end

     0   :  { %15 = vsyncpa [#allocation3], 0  ;;  %s2897_s0 = inlined_call_operand.hbm [shape: bf16[128,128], index: 0, kind: input, shape index: {}]   ;;  %s2898_s1 = inlined_call_operand.hbm [shape: f32[128,128], index: 1, kind: input, shape index: {}]   ;;  %s2899_s2 = inlined_call_operand.hbm [shape: bf16[128,128], index: 2, kind: input, shape index: {}]   ;;  %s2900_s3 = inlined_call_operand.vmem [shape: f32[1,128], index: 3, kind: input, shape index: {}]   ;;  %s2901_s4 = inlined_call_operand.hbm [shape: bf16[128,128], index: 4, kind: input, shape index: {}]   ;;  %s2902_s5 = inlined_call_operand.vmem [shape: f32[1,128], index: 5, kind: input, shape index: {}]   ;;  %s2903_s6 = inlined_call_operand.hbm [shape: bf16[128,128], index: 6, kind: input, shape index: {}]   ;;  %s2904_s7 = inlined_call_operand.vmem [shape: f32[1,128], index: 7, kind: input, shape index: {}]   ;;  %s2905_s8 = inlined_call_operand.hbm [shape: bf16[128,128], index: 8, kind: input, shape index: {}]   ;;  %s2906_s9 = inlined_call_operand.vmem [shape: f32[1,128], index: 9, kind: input, shape index: {}]   ;;  %s2907_s10 = inlined_call_operand.hbm [shape: f32[128,128], index: 10, kind: output, shape index: {}]  }
   0x1   :  { %16 = vsyncpa [#allocation6], 0 }
   0x2   :  { %17 = vsyncpa [#allocation9], 0 }
   0x3   :  { %18 = vsyncpa [#allocation12], 0 }
   0x4   :  { %19 = vsyncpa [#allocation4], 0  ;;  %s2400_s13 = smov [#allocation5]  }
   0x5   :  { %s37_s14 = sshll.u32 %s2400_s13, 4  ;;  %s38_s14 = int_to_ptr.vmem [resolvable:$true] %s37_s14 }
   0x6   :  { %s2258_s15 = scalar_lea.vmem %s38_s14, 2048  ;;  %p2263_p1 = scmp.lt.s32.totalorder %s38_s14, %s38_s14 }
   0x7   :  { %p2259_p0 = scmp.ne.s32.totalorder %s38_s14, %s2258_s15  ;;  %p2264_p2 = scmp.lt.s32.totalorder %s2258_s15, %s2258_s15 }
   0x9   :  { %p2265_p3 = por %p2264_p2, %p2263_p1 }
   0xb   :  { %p2266_p4 = pnand %p2265_p3, %p2259_p0 }
   0xd   :  { %2269 = shalt.err (!%p2266_p4)
}
   0xe   :  { %s2401_s16 = smov 128   ;;  %s2402_s17 = smov 8  }
   0xf   :  { %43 = dma.hbm_to_vmem [thread:$0]  %s2898_s1, 2048, %s38_s14, [#allocation6], %s2401_s16, %s2401_s16, %s2402_s17  }
  0x10   :  { %s2403_s20 = smov [#allocation8]   ;;  %s2404_s22 = smov [#allocation2]  }
  0x11   :  { %s63_s21 = sshll.u32 %s2403_s20, 4  ;;  %s25_s23 = sshll.u32 %s2404_s22, 4  ;;  %s64_s21 = int_to_ptr.vmem [resolvable:$true] %s63_s21  ;;  %s26_s23 = int_to_ptr.vmem [resolvable:$true] %s25_s23 }
  0x12   :  { %s2278_s24 = scalar_lea.vmem %s64_s21, 1024  ;;  %p2283_p6 = scmp.lt.s32.totalorder %s64_s21, %s64_s21 }
  0x13   :  { %p2279_p5 = scmp.ne.s32.totalorder %s64_s21, %s2278_s24  ;;  %p2284_p7 = scmp.lt.s32.totalorder %s2278_s24, %s2278_s24 }
  0x15   :  { %p2285_p8 = por %p2284_p7, %p2283_p6 }
  0x17   :  { %p2286_p9 = pnand %p2285_p8, %p2279_p5 }
  0x19   :  { %2289 = shalt.err (!%p2286_p9)
}
  0x1a   :  { %s2405_s25 = smov 64   ;;  %s2406_s26 = smov 4  }
  0x1b   :  { %69 = dma.hbm_to_vmem [thread:$0]  %s2901_s4, 1024, %s64_s21, [#allocation9], %s2405_s25, %s2405_s25, %s2406_s26  }
  0x1c   :  { %s2298_s1 = scalar_lea.vmem %s26_s23, 1024  ;;  %p2303_p11 = scmp.lt.s32.totalorder %s26_s23, %s26_s23 }
  0x1d   :  { %p2299_p10 = scmp.ne.s32.totalorder %s26_s23, %s2298_s1  ;;  %p2304_p12 = scmp.lt.s32.totalorder %s2298_s1, %s2298_s1 }
  0x1f   :  { %p2305_p13 = por %p2304_p12, %p2303_p11 }
  0x21   :  { %p2306_p0 = pnand %p2305_p13, %p2299_p10 }
  0x23   :  { %2309 = shalt.err (!%p2306_p0)
}
  0x24   :  { %31 = dma.hbm_to_vmem [thread:$0]  %s2897_s0, 1024, %s26_s23, [#allocation3], %s2405_s25, %s2405_s25, %s2406_s26  }
  0x25   :  { %s2407_s11 = smov [#allocation7]   ;;  %s2408_s13 = smov [#allocation10]  }
  0x26   :  { %s49_s12 = sshll.u32 %s2407_s11, 4  ;;  %s77_s4 = sshll.u32 %s2408_s13, 4  ;;  %s50_s12 = int_to_ptr.vmem [resolvable:$true] %s49_s12  ;;  %s78_s4 = int_to_ptr.vmem [resolvable:$true] %s77_s4 }
  0x27   :  { %s2318_s14 = scalar_lea.vmem %s50_s12, 1024  ;;  %p2323_p2 = scmp.lt.s32.totalorder %s50_s12, %s50_s12 }
  0x28   :  { %p2319_p1 = scmp.ne.s32.totalorder %s50_s12, %s2318_s14  ;;  %p2324_p3 = scmp.lt.s32.totalorder %s2318_s14, %s2318_s14 }
  0x2a   :  { %p2325_p4 = por %p2324_p3, %p2323_p2 }
  0x2c   :  { %p2326_p5 = pnand %p2325_p4, %p2319_p1 }
  0x2e   :  { %2329 = shalt.err (!%p2326_p5)
}
  0x2f   :  { %55 = dma.hbm_to_vmem [thread:$0]  %s2899_s2, 1024, %s50_s12, [#allocation6], %s2405_s25, %s2405_s25, %s2406_s26  }
  0x30   :  { %s2338_s0 = scalar_lea.vmem %s78_s4, 1024  ;;  %p2343_p7 = scmp.lt.s32.totalorder %s78_s4, %s78_s4 }
  0x31   :  { %p2339_p6 = scmp.ne.s32.totalorder %s78_s4, %s2338_s0  ;;  %p2344_p8 = scmp.lt.s32.totalorder %s2338_s0, %s2338_s0 }
  0x33   :  { %p2345_p9 = por %p2344_p8, %p2343_p7 }
  0x35   :  { %p2346_p10 = pnand %p2345_p9, %p2339_p6 }
  0x37   :  { %2349 = shalt.err (!%p2346_p10)
}
  0x38   :  { %83 = dma.hbm_to_vmem [thread:$0]  %s2903_s6, 1024, %s78_s4, [#allocation9], %s2405_s25, %s2405_s25, %s2406_s26  }
  0x39   :  { %s2409_s21 = smov [#allocation11]  }
  0x3a   :  { %s91_s22 = sshll.u32 %s2409_s21, 4  ;;  %s92_s22 = int_to_ptr.vmem [resolvable:$true] %s91_s22 }
  0x3b   :  { %s2358_s23 = scalar_lea.vmem %s92_s22, 1024  ;;  %p2363_p12 = scmp.lt.s32.totalorder %s92_s22, %s92_s22 }
  0x3c   :  { %p2359_p11 = scmp.ne.s32.totalorder %s92_s22, %s2358_s23  ;;  %p2364_p13 = scmp.lt.s32.totalorder %s2358_s23, %s2358_s23 }
  0x3e   :  { %p2365_p0 = por %p2364_p13, %p2363_p12 }
  0x40   :  { %p2366_p1 = pnand %p2365_p0, %p2359_p11 }
  0x42   :  { %2369 = shalt.err (!%p2366_p1)
}
  0x43   :  { %97 = dma.hbm_to_vmem [thread:$0]  %s2905_s8, 1024, %s92_s22, [#allocation12], %s2405_s25, %s2405_s25, %s2406_s26  }
  0x44   :  { %2390 = dma.done.wait [#allocation3], 1024  }
  0x45   :  { %2391 = vsyncadd [#allocation3], 4294966272 }
  0x46   :  { %2392 = dma.done.wait [#allocation6], 3072  }
  0x47   :  { %2393 = vsyncadd [#allocation6], 4294964224 }
  0x48   :  { %2394 = dma.done.wait [#allocation9], 2048  }
  0x49   :  { %2395 = vsyncadd [#allocation9], 4294965248 }
  0x4a   :  { %2396 = dma.done.wait [#allocation12], 1024  }
  0x4b   :  { %2397 = vsyncadd [#allocation12], 4294966272  ;;  %v2410_v0 = vmov 1065369472   ;;  %v2504_v1 = vld [vmem:[#allocation2] sm:$0xff]   ;;  %v2179_v2 = vld [vmem:[#allocation7 + $0x38] sm:$0xff]  }
  0x4c   :  { %1900 = vmatprep.subr.bf16.mxu0 %v2410_v0  ;;  %1916 = vmatprep.mubr.bf16.mxu0 %v2504_v1  ;;  %v2180_v3 = vld [vmem:[#allocation7 + $0x30] sm:$0xff]   ;;  %v2181_v4 = vld [vmem:[#allocation7 + $0x28] sm:$0xff]   ;;  %v2182_v5 = vld [vmem:[#allocation7 + $0x20] sm:$0xff]   ;;  %v2411_v41 = vmov 0  }
  0x4d   :  { %1901 = vmatpush3.bf16.msra.mxu0 %v2410_v0  ;;  %1932 = vmatprep.subr.bf16.mxu1 %v2179_v2  ;;  %v393_v6 = vld [vmem:[#allocation5] sm:$0xff]  ;;  %v394_v7 = vld [vmem:[#allocation5 + $0x8] sm:$0xff]  ;;  %v2183_v10 = vld [vmem:[#allocation7 + $0x18] sm:$0xff]  }
  0x4e   :  { %1902 = vmatprep.subr.bf16.mxu0 %v2410_v0  ;;  %1933 = vmatpush3.bf16.msra.mxu1 %v2179_v2  ;;  %v409_v8 = vpack.c.bf16 %v394_v7, %v393_v6  ;;  %v2507_v9 = vld [vmem:[#allocation2 + $0x8] sm:$0xff]   ;;  %v2509_v11 = vld [vmem:[#allocation2 + $0x10] sm:$0xff]   ;;  %v2513_v14 = vld [vmem:[#allocation2 + $0x18] sm:$0xff]  }
  0x4f   :  { %1934 = vmatprep.subr.bf16.mxu1 %v2180_v3  ;;  %v2184_v12 = vld [vmem:[#allocation7 + $0x10] sm:$0xff]   ;;  %v2185_v13 = vld [vmem:[#allocation7 + $0x8] sm:$0xff]   ;;  %v2515_v15 = vld [vmem:[#allocation2 + $0x20] sm:$0xff]   ;;  %2169 = vset.pattern.permute.xlu0 %v2411_v41 }
  0x50   :  { %1948 = vmatprep.mubr.bf16.mxu1 %v409_v8  ;;  %v2186_v16 = vld [vmem:[#allocation7] sm:$0xff]   ;;  %v395_v17 = vld [vmem:[#allocation5 + $0x10] sm:$0xff]  ;;  %v396_v18 = vld [vmem:[#allocation5 + $0x18] sm:$0xff]  ;;  %2170 = vset.pattern.permute.xlu1 %v2411_v41 }
  0x51   :  { %1903 = vmatpush3.bf16.msra.mxu0 %v2410_v0  ;;  %v397_v19 = vld [vmem:[#allocation5 + $0x20] sm:$0xff]  ;;  %v398_v20 = vld [vmem:[#allocation5 + $0x28] sm:$0xff]  ;;  %v410_v22 = vpack.c.bf16 %v396_v18, %v395_v17  ;;  %v2521_v23 = vld [vmem:[#allocation2 + $0x30] sm:$0xff]  }
  0x52   :  { %1904 = vmatprep.subr.bf16.mxu0 %v2410_v0  ;;  %1935 = vmatpush3.bf16.msra.mxu1 %v2180_v3  ;;  %v2519_v21 = vld [vmem:[#allocation2 + $0x28] sm:$0xff]   ;;  %v411_v24 = vpack.c.bf16 %v398_v20, %v397_v19  ;;  %v399_v25 = vld [vmem:[#allocation5 + $0x30] sm:$0xff]  ;;  %v400_v26 = vld [vmem:[#allocation5 + $0x38] sm:$0xff] }
  0x53   :  { %1936 = vmatprep.subr.bf16.mxu1 %v2181_v4  ;;  %v401_v27 = vld [vmem:[#allocation5 + $0x40] sm:$0xff]  ;;  %v402_v28 = vld [vmem:[#allocation5 + $0x48] sm:$0xff]  ;;  %v2525_v29 = vld [vmem:[#allocation2 + $0x38] sm:$0xff]   ;;  %v412_v30 = vpack.c.bf16 %v400_v26, %v399_v25 }
  0x54   :  { %v413_v31 = vpack.c.bf16 %v402_v28, %v401_v27  ;;  %v403_v32 = vld [vmem:[#allocation5 + $0x50] sm:$0xff]  ;;  %v404_v33 = vld [vmem:[#allocation5 + $0x58] sm:$0xff]  ;;  %v405_v34 = vld [vmem:[#allocation5 + $0x60] sm:$0xff] }
  0x55   :  { %1905 = vmatpush3.bf16.msra.mxu0 %v2410_v0  ;;  %v406_v35 = vld [vmem:[#allocation5 + $0x68] sm:$0xff]  ;;  %v414_v36 = vpack.c.bf16 %v404_v33, %v403_v32  ;;  %v407_v38 = vld [vmem:[#allocation5 + $0x70] sm:$0xff]  ;;  %v408_v39 = vld [vmem:[#allocation5 + $0x78] sm:$0xff] }
  0x56   :  { %1906 = vmatprep.subr.bf16.mxu0 %v2410_v0  ;;  %1937 = vmatpush3.bf16.msra.mxu1 %v2181_v4  ;;  %v415_v37 = vpack.c.bf16 %v406_v35, %v405_v34  ;;  %v416_v40 = vpack.c.bf16 %v408_v39, %v407_v38  ;;  %v2187_v34 = vld [vmem:[#allocation8 + $0x38] sm:$0xff]   ;;  %v2188_v35 = vld [vmem:[#allocation8 + $0x30] sm:$0xff]  }
  0x57   :  { %1938 = vmatprep.subr.bf16.mxu1 %v2182_v5 }
  0x59   :  { %1907 = vmatpush3.bf16.msra.mxu0 %v2410_v0 }
  0x5a   :  { %1908 = vmatprep.subr.bf16.mxu0 %v2410_v0  ;;  %1939 = vmatpush3.bf16.msra.mxu1 %v2182_v5 }
  0x5b   :  { %1940 = vmatprep.subr.bf16.mxu1 %v2183_v10 }
  0x5d   :  { %1909 = vmatpush3.bf16.msra.mxu0 %v2410_v0 }
  0x5e   :  { %1910 = vmatprep.subr.bf16.mxu0 %v2410_v0  ;;  %1941 = vmatpush3.bf16.msra.mxu1 %v2183_v10 }
  0x5f   :  { %1942 = vmatprep.subr.bf16.mxu1 %v2184_v12 }
  0x61   :  { %1911 = vmatpush3.bf16.msra.mxu0 %v2410_v0 }
  0x62   :  { %1912 = vmatprep.subr.bf16.mxu0 %v2410_v0  ;;  %1943 = vmatpush3.bf16.msra.mxu1 %v2184_v12 }
  0x63   :  { %1944 = vmatprep.subr.bf16.mxu1 %v2185_v13 }
  0x65   :  { %1913 = vmatpush3.bf16.msra.mxu0 %v2410_v0 }
  0x66   :  { %1914 = vmatprep.subr.bf16.mxu0 %v2410_v0  ;;  %1945 = vmatpush3.bf16.msra.mxu1 %v2185_v13 }
  0x67   :  { %1946 = vmatprep.subr.bf16.mxu1 %v2186_v16 }
  0x69   :  { %1915 = vmatpush3.bf16.msra.mxu0 %v2410_v0 }
  0x6a   :  { %1947 = vmatpush3.bf16.msra.mxu1 %v2186_v16 }
  0x6b   :  { %1996 = vmatprep.subr.bf16.mxu1 %v2187_v34 }
  0x6c   :  { %1917 = vmatmul.mubr.bf16.vlgmr.msra.gmra.mxu0 %v2507_v9 }
  0x6d   :  { %1920 = vmatprep.mubr.bf16.mxu0 %v2509_v11  ;;  %1949 = vmatmul.mubr.bf16.vlgmr.msra.gmra.mxu1 %v410_v22 }
  0x6e   :  { %1952 = vmatprep.mubr.bf16.mxu1 %v411_v24  ;;  %1997 = vmatpush3.bf16.msra.mxu1 %v2187_v34 }
  0x6f   :  { %1998 = vmatprep.subr.bf16.mxu1 %v2188_v35 }
  0x72   :  { %1999 = vmatpush3.bf16.msra.mxu1 %v2188_v35 }
  0x74   :  { %1921 = vmatmul.mubr.bf16.gmra.mxu0 %v2513_v14 }
  0x75   :  { %1924 = vmatprep.mubr.bf16.mxu0 %v2515_v15  ;;  %1953 = vmatmul.mubr.bf16.gmra.mxu1 %v412_v30 }
  0x76   :  { %1956 = vmatprep.mubr.bf16.mxu1 %v413_v31 }
  0x7c   :  { %1925 = vmatmul.mubr.bf16.gmra.mxu0 %v2519_v21 }
  0x7d   :  { %1928 = vmatprep.mubr.bf16.mxu0 %v2521_v23  ;;  %1957 = vmatmul.mubr.bf16.gmra.mxu1 %v414_v36  ;;  %v2189_v36 = vld [vmem:[#allocation8 + $0x28] sm:$0xff]  }
  0x7e   :  { %1960 = vmatprep.mubr.bf16.mxu1 %v415_v37  ;;  %2000 = vmatprep.subr.bf16.mxu1 %v2189_v36  ;;  %v2190_v37 = vld [vmem:[#allocation8 + $0x20] sm:$0xff]  }
  0x7f   :  { %2001 = vmatpush3.bf16.msra.mxu1 %v2189_v36 }
  0x80   :  { %2002 = vmatprep.subr.bf16.mxu1 %v2190_v37 }
  0x83   :  { %2003 = vmatpush3.bf16.msra.mxu1 %v2190_v37 }
  0x84   :  { %1929 = vmatmul.mubr.bf16.gmra.mxu0 %v2525_v29 }
  0x85   :  { %1980 = vmatprep.mubr.bf16.mxu0 %v2504_v1  ;;  %1961 = vmatmul.mubr.bf16.gmra.mxu1 %v416_v40 }
 0x12c   :  { %v1918_v42 = vpop.f32.mrf.mxu0 }
 0x12d   :  { %v283_v13 = vmax.f32 %v1918_v42, 1.0  ;;  %v1950_v38 = vpop.f32.mrf.mxu1 }
 0x12e   :  { %v218_v43 = vpop.f32.mrf.mxu0 }
 0x12f   :  { %v281_v19 = vmax.f32 %v218_v43, 1.0  ;;  %v2529_v39 = vpop.f32.mrf.mxu1 }
 0x130   :  { %v1919_v44 = vpop.f32.mrf.mxu0 }
 0x131   :  { %v284_v17 = vmax.f32 %v1919_v44, 1.0  ;;  %v1951_v40 = vpop.f32.mrf.mxu1 }
 0x132   :  { %v221_v45 = vpop.f32.mrf.mxu0 }
 0x133   :  { %v282_v22 = vmax.f32 %v221_v45, 1.0  ;;  %v2531_v41 = vpop.f32.mrf.mxu1 }
 0x134   :  { %v1922_v46 = vpop.f32.mrf.mxu0 }
 0x135   :  { %v287_v3 = vmax.f32 %v1922_v46, 1.0  ;;  %v1954_v42 = vpop.f32.mrf.mxu1 }
 0x136   :  { %v234_v47 = vpop.f32.mrf.mxu0 }
 0x137   :  { %v285_v7 = vmax.f32 %v234_v47, 1.0  ;;  %v531_v43 = vpop.f32.mrf.mxu1 }
 0x138   :  { %v1923_v48 = vpop.f32.mrf.mxu0 }
 0x139   :  { %v288_v5 = vmax.f32 %v1923_v48, 1.0  ;;  %v1955_v44 = vpop.f32.mrf.mxu1 }
 0x13a   :  { %v237_v49 = vpop.f32.mrf.mxu0 }
 0x13b   :  { %v286_v10 = vmax.f32 %v237_v49, 1.0  ;;  %v534_v45 = vpop.f32.mrf.mxu1 }
 0x13c   :  { %v1926_v50 = vpop.f32.mrf.mxu0 }
 0x13d   :  { %v291_v61 = vmax.f32 %v1926_v50, 1.0  ;;  %v1958_v46 = vpop.f32.mrf.mxu1 }
 0x13e   :  { %v250_v51 = vpop.f32.mrf.mxu0 }
 0x13f   :  { %v289_v0 = vmax.f32 %v250_v51, 1.0  ;;  %v547_v47 = vpop.f32.mrf.mxu1 }
 0x140   :  { %v1927_v52 = vpop.f32.mrf.mxu0 }
 0x141   :  { %v292_v63 = vmax.f32 %v1927_v52, 1.0  ;;  %v1959_v48 = vpop.f32.mrf.mxu1 }
 0x142   :  { %v253_v53 = vpop.f32.mrf.mxu0 }
 0x143   :  { %v290_v2 = vmax.f32 %v253_v53, 1.0  ;;  %v550_v49 = vpop.f32.mrf.mxu1 }
 0x144   :  { %v1930_v54 = vpop.f32.mrf.mxu0 }
 0x145   :  { %v295_v55 = vmax.f32 %v1930_v54, 1.0  ;;  %v1962_v50 = vpop.f32.mrf.mxu1 }
 0x146   :  { %v266_v56 = vpop.f32.mrf.mxu0 }
 0x147   :  { %2211 = vrsqrt.f32 %v295_v55  ;;  %v293_v57 = vmax.f32 %v266_v56, 1.0  ;;  %v563_v51 = vpop.f32.mrf.mxu1 }
 0x148   :  { %v1931_v58 = vpop.f32.mrf.mxu0 }
 0x149   :  { %2213 = vrsqrt.f32 %v293_v57  ;;  %v296_v59 = vmax.f32 %v1931_v58, 1.0  ;;  %v1963_v53 = vpop.f32.mrf.mxu1 }
 0x14a   :  { %v269_v60 = vpop.f32.mrf.mxu0 }
 0x14b   :  { %2215 = vrsqrt.f32 %v296_v59  ;;  %v294_v62 = vmax.f32 %v269_v60, 1.0  ;;  %v566_v58 = vpop.f32.mrf.mxu1 }
 0x14d   :  { %2217 = vrsqrt.f32 %v294_v62 }
 0x14e   :  { %2219 = vrsqrt.f32 %v291_v61 }
 0x14f   :  { %2221 = vrsqrt.f32 %v292_v63 }
 0x150   :  { %2223 = vrsqrt.f32 %v289_v0 }
 0x151   :  { %2225 = vrsqrt.f32 %v290_v2 }
 0x152   :  { %2227 = vrsqrt.f32 %v287_v3 }
 0x153   :  { %2229 = vrsqrt.f32 %v288_v5 }
 0x154   :  { %v2212_v4 = vpop.eup %2211  ;;  %2231 = vrsqrt.f32 %v285_v7 }
 0x155   :  { %385 = vperm.xlu0 %2169, %v2212_v4   ;;  %2233 = vrsqrt.f32 %v286_v10 }
 0x156   :  { %v2214_v6 = vpop.eup %2213  ;;  %2235 = vrsqrt.f32 %v283_v13 }
 0x157   :  { %375 = vperm.xlu1 %2170, %v2214_v6   ;;  %2237 = vrsqrt.f32 %v284_v17 }
 0x158   :  { %v2216_v8 = vpop.eup %2215  ;;  %2239 = vrsqrt.f32 %v281_v19 }
 0x159   :  { %390 = vperm.xlu0 %2169, %v2216_v8   ;;  %2241 = vrsqrt.f32 %v282_v22 }
 0x15a   :  { %v2218_v12 = vpop.eup %2217 }
 0x15b   :  { %380 = vperm.xlu1 %2170, %v2218_v12   ;;  %v2220_v16 = vpop.eup %2219 }
 0x15c   :  { %v2222_v18 = vpop.eup %2221 }
 0x15d   :  { %365 = vperm.xlu0 %2169, %v2220_v16   ;;  %v2224_v20 = vpop.eup %2223 }
 0x15e   :  { %v2226_v24 = vpop.eup %2225 }
 0x15f   :  { %370 = vperm.xlu1 %2170, %v2222_v18   ;;  %v2228_v25 = vpop.eup %2227 }
 0x160   :  { %v2230_v26 = vpop.eup %2229 }
 0x161   :  { %355 = vperm.xlu0 %2169, %v2224_v20   ;;  %v2232_v27 = vpop.eup %2231 }
 0x162   :  { %v2234_v28 = vpop.eup %2233 }
 0x163   :  { %360 = vperm.xlu1 %2170, %v2226_v24   ;;  %v2236_v30 = vpop.eup %2235 }
 0x164   :  { %v2238_v31 = vpop.eup %2237 }
 0x165   :  { %345 = vperm.xlu0 %2169, %v2228_v25   ;;  %v2240_v32 = vpop.eup %2239 }
 0x166   :  { %v2242_v33 = vpop.eup %2241 }
 0x167   :  { %350 = vperm.xlu1 %2170, %v2230_v26  }
 0x169   :  { %335 = vperm.xlu0 %2169, %v2232_v27  }
 0x16b   :  { %340 = vperm.xlu1 %2170, %v2234_v28  }
 0x16d   :  { %325 = vperm.xlu0 %2169, %v2236_v30  }
 0x16f   :  { %330 = vperm.xlu1 %2170, %v2238_v31  }
 0x171   :  { %315 = vperm.xlu0 %2169, %v2240_v32  }
 0x173   :  { %320 = vperm.xlu1 %2170, %v2242_v33  }
 0x1d0   :  { %v2533_v52 = vpop.permute.xlu0 %385 }
 0x1d1   :  { %v592_v56 = vmul.f32 %v1962_v50, %v2533_v52 }
 0x1d2   :  { %v2535_v54 = vpop.permute.xlu1 %375 }
 0x1d3   :  { %v590_v61 = vmul.f32 %v563_v51, %v2535_v54 }
 0x1d4   :  { %v2537_v55 = vpop.permute.xlu0 %390 }
 0x1d5   :  { %v593_v57 = vmul.f32 %v1963_v53, %v2537_v55 }
 0x1d6   :  { %v2541_v59 = vpop.permute.xlu1 %380 }
 0x1d7   :  { %v601_v60 = vpack.c.bf16 %v593_v57, %v592_v56  ;;  %v591_v62 = vmul.f32 %v566_v58, %v2541_v59 }
 0x1d8   :  { %v2545_v63 = vpop.permute.xlu0 %365 }
 0x1d9   :  { %1964 = vmatprep.subr.bf16.mxu0 %v601_v60  ;;  %v600_v0 = vpack.c.bf16 %v591_v62, %v590_v61  ;;  %v588_v3 = vmul.f32 %v1958_v46, %v2545_v63 }
 0x1da   :  { %1965 = vmatpush3.bf16.msra.mxu0 %v601_v60  ;;  %v2547_v2 = vpop.permute.xlu1 %370 }
 0x1db   :  { %1966 = vmatprep.subr.bf16.mxu0 %v600_v0  ;;  %v589_v4 = vmul.f32 %v1959_v48, %v2547_v2 }
 0x1dc   :  { %v2551_v5 = vpop.permute.xlu0 %355 }
 0x1dd   :  { %v599_v6 = vpack.c.bf16 %v589_v4, %v588_v3  ;;  %v586_v8 = vmul.f32 %v547_v47, %v2551_v5  ;;  %v2596_v47 = vld [vmem:[%s2900_s3] ss:$0 sm:$0xff] }
 0x1de   :  { %1967 = vmatpush3.bf16.msra.mxu0 %v600_v0  ;;  %v2553_v7 = vpop.permute.xlu1 %360 }
 0x1df   :  { %1968 = vmatprep.subr.bf16.mxu0 %v599_v6  ;;  %v587_v10 = vmul.f32 %v550_v49, %v2553_v7 }
 0x1e0   :  { %v2557_v12 = vpop.permute.xlu0 %345 }
 0x1e1   :  { %v598_v13 = vpack.c.bf16 %v587_v10, %v586_v8  ;;  %v584_v17 = vmul.f32 %v1954_v42, %v2557_v12 }
 0x1e2   :  { %1969 = vmatpush3.bf16.msra.mxu0 %v599_v6  ;;  %v2559_v16 = vpop.permute.xlu1 %350 }
 0x1e3   :  { %1970 = vmatprep.subr.bf16.mxu0 %v598_v13  ;;  %v585_v18 = vmul.f32 %v1955_v44, %v2559_v16 }
 0x1e4   :  { %v2563_v19 = vpop.permute.xlu0 %335 }
 0x1e5   :  { %v597_v20 = vpack.c.bf16 %v585_v18, %v584_v17  ;;  %v582_v24 = vmul.f32 %v531_v43, %v2563_v19 }
 0x1e6   :  { %1971 = vmatpush3.bf16.msra.mxu0 %v598_v13  ;;  %v2565_v22 = vpop.permute.xlu1 %340 }
 0x1e7   :  { %1972 = vmatprep.subr.bf16.mxu0 %v597_v20  ;;  %v583_v25 = vmul.f32 %v534_v45, %v2565_v22 }
 0x1e8   :  { %v2569_v26 = vpop.permute.xlu0 %325 }
 0x1e9   :  { %v596_v27 = vpack.c.bf16 %v583_v25, %v582_v24  ;;  %v580_v30 = vmul.f32 %v1950_v38, %v2569_v26  ;;  %v2191_v38 = vld [vmem:[#allocation8 + $0x18] sm:$0xff]  }
 0x1ea   :  { %1973 = vmatpush3.bf16.msra.mxu0 %v597_v20  ;;  %v2571_v28 = vpop.permute.xlu1 %330  ;;  %2004 = vmatprep.subr.bf16.mxu1 %v2191_v38 }
 0x1eb   :  { %1974 = vmatprep.subr.bf16.mxu0 %v596_v27  ;;  %v581_v31 = vmul.f32 %v1951_v40, %v2571_v28  ;;  %2005 = vmatpush3.bf16.msra.mxu1 %v2191_v38  ;;  %v2193_v40 = vld [vmem:[#allocation8 + $0x8] sm:$0xff]  }
 0x1ec   :  { %v2575_v32 = vpop.permute.xlu0 %315 }
 0x1ed   :  { %v595_v33 = vpack.c.bf16 %v581_v31, %v580_v30  ;;  %v578_v35 = vmul.f32 %v2529_v39, %v2575_v32  ;;  %v2192_v39 = vld [vmem:[#allocation8 + $0x10] sm:$0xff]  }
 0x1ee   :  { %1975 = vmatpush3.bf16.msra.mxu0 %v596_v27  ;;  %v2577_v34 = vpop.permute.xlu1 %320  ;;  %2006 = vmatprep.subr.bf16.mxu1 %v2192_v39 }
 0x1ef   :  { %1976 = vmatprep.subr.bf16.mxu0 %v595_v33  ;;  %v579_v36 = vmul.f32 %v2531_v41, %v2577_v34  ;;  %2007 = vmatpush3.bf16.msra.mxu1 %v2192_v39  ;;  %v2194_v41 = vld [vmem:[#allocation8] sm:$0xff]  }
 0x1f0   :  { %2008 = vmatprep.subr.bf16.mxu1 %v2193_v40 }
 0x1f1   :  { %v594_v37 = vpack.c.bf16 %v579_v36, %v578_v35 }
 0x1f2   :  { %1977 = vmatpush3.bf16.msra.mxu0 %v595_v33 }
 0x1f3   :  { %1978 = vmatprep.subr.bf16.mxu0 %v594_v37  ;;  %2009 = vmatpush3.bf16.msra.mxu1 %v2193_v40 }
 0x1f4   :  { %2010 = vmatprep.subr.bf16.mxu1 %v2194_v41 }
 0x1f6   :  { %1979 = vmatpush3.bf16.msra.mxu0 %v594_v37 }
 0x1f7   :  { %2011 = vmatpush3.bf16.msra.mxu1 %v2194_v41 }
 0x1f9   :  { %1981 = vmatmul.mubr.bf16.vlgmr.msra.gmra.mxu0 %v2507_v9 }
 0x1fa   :  { %1984 = vmatprep.mubr.bf16.mxu0 %v2509_v11 }
 0x201   :  { %1985 = vmatmul.mubr.bf16.gmra.mxu0 %v2513_v14 }
 0x202   :  { %1988 = vmatprep.mubr.bf16.mxu0 %v2515_v15 }
 0x209   :  { %1989 = vmatmul.mubr.bf16.gmra.mxu0 %v2519_v21 }
 0x20a   :  { %1992 = vmatprep.mubr.bf16.mxu0 %v2521_v23 }
 0x211   :  { %1993 = vmatmul.mubr.bf16.gmra.mxu0 %v2525_v29 }
 0x212   :  { %2044 = vmatprep.mubr.bf16.mxu0 %v2504_v1 }
 0x2b9   :  { %v1982_v42 = vpop.f32.mrf.mxu0 }
 0x2ba   :  { %v701_v45 = vmul.f32 %v1982_v42, %v2569_v26 }
 0x2bb   :  { %v636_v43 = vpop.f32.mrf.mxu0 }
 0x2bc   :  { %v699_v44 = vmul.f32 %v636_v43, %v2575_v32  ;;  %v2607_v56 = vadd.f32 %v2596_v47, %v701_v45 }
 0x2bd   :  { %v1983_v46 = vpop.f32.mrf.mxu0 }
 0x2be   :  { %v702_v48 = vmul.f32 %v1983_v46, %v2571_v28  ;;  %v2600_v50 = vadd.f32 %v2596_v47, %v699_v44  ;;  %v2923_v3 = vmax.f32 %v2607_v56, 0.0 }
 0x2bf   :  { %v639_v49 = vpop.f32.mrf.mxu0 }
 0x2c0   :  { %v2603_v51 = vadd.f32 %v2596_v47, %v702_v48  ;;  %v700_v53 = vmul.f32 %v639_v49, %v2577_v34  ;;  %v2922_v62 = vmax.f32 %v2600_v50, 0.0 }
 0x2c1   :  { %v1986_v57 = vpop.f32.mrf.mxu0 }
 0x2c2   :  { %v2610_v58 = vadd.f32 %v2596_v47, %v700_v53  ;;  %v2921_v60 = vmax.f32 %v2603_v51, 0.0  ;;  %v705_v8 = vmul.f32 %v1986_v57, %v2557_v12 }
 0x2c3   :  { %v652_v61 = vpop.f32.mrf.mxu0 }
 0x2c4   :  { %v2920_v0 = vmax.f32 %v2610_v58, 0.0  ;;  %v703_v4 = vmul.f32 %v652_v61, %v2563_v19  ;;  %v755_v17 = vpack.c.bf16 %v2921_v60, %v2923_v3  ;;  %v2635_v30 = vadd.f32 %v2596_v47, %v705_v8 }
 0x2c5   :  { %v1987_v6 = vpop.f32.mrf.mxu0 }
 0x2c6   :  { %v706_v10 = vmul.f32 %v1987_v6, %v2559_v16  ;;  %v754_v13 = vpack.c.bf16 %v2920_v0, %v2922_v62  ;;  %v2632_v25 = vadd.f32 %v2596_v47, %v703_v4  ;;  %v2919_v40 = vmax.f32 %v2635_v30, 0.0 }
 0x2c7   :  { %v655_v18 = vpop.f32.mrf.mxu0 }
 0x2c8   :  { %v2628_v20 = vadd.f32 %v2596_v47, %v706_v10  ;;  %v704_v24 = vmul.f32 %v655_v18, %v2565_v22  ;;  %2012 = vmatprep.mubr.bf16.mxu1 %v754_v13  ;;  %v2917_v37 = vmax.f32 %v2632_v25, 0.0 }
 0x2c9   :  { %v1990_v27 = vpop.f32.mrf.mxu0  ;;  %2013 = vmatmul.mubr.bf16.vlgmr.msra.gmra.mxu1 %v755_v17 }
 0x2ca   :  { %v2638_v31 = vadd.f32 %v2596_v47, %v704_v24  ;;  %v2918_v35 = vmax.f32 %v2628_v20, 0.0  ;;  %v709_v41 = vmul.f32 %v1990_v27, %v2545_v63 }
 0x2cb   :  { %v668_v33 = vpop.f32.mrf.mxu0 }
 0x2cc   :  { %v2916_v36 = vmax.f32 %v2638_v31, 0.0  ;;  %v707_v38 = vmul.f32 %v668_v33, %v2551_v5  ;;  %v757_v48 = vpack.c.bf16 %v2918_v35, %v2919_v40  ;;  %v2663_v57 = vadd.f32 %v2596_v47, %v709_v41 }
 0x2cd   :  { %v1991_v39 = vpop.f32.mrf.mxu0 }
 0x2ce   :  { %v710_v42 = vmul.f32 %v1991_v39, %v2547_v2  ;;  %v756_v44 = vpack.c.bf16 %v2916_v36, %v2917_v37  ;;  %v2660_v49 = vadd.f32 %v2596_v47, %v707_v38  ;;  %v2915_v18 = vmax.f32 %v2663_v57, 0.0 }
 0x2cf   :  { %v671_v43 = vpop.f32.mrf.mxu0 }
 0x2d0   :  { %v2652_v45 = vadd.f32 %v2596_v47, %v710_v42  ;;  %v708_v46 = vmul.f32 %v671_v43, %v2553_v7  ;;  %2016 = vmatprep.mubr.bf16.mxu1 %v756_v44  ;;  %v2912_v13 = vmax.f32 %v2660_v49, 0.0 }
 0x2d1   :  { %v1994_v53 = vpop.f32.mrf.mxu0  ;;  %2017 = vmatmul.mubr.bf16.gmra.mxu1 %v757_v48 }
 0x2d2   :  { %v2666_v61 = vadd.f32 %v2596_v47, %v708_v46  ;;  %v2911_v6 = vmax.f32 %v2652_v45, 0.0  ;;  %v713_v24 = vmul.f32 %v1994_v53, %v2533_v52 }
 0x2d3   :  { %v684_v4 = vpop.f32.mrf.mxu0 }
 0x2d4   :  { %v2910_v8 = vmax.f32 %v2666_v61, 0.0  ;;  %v711_v10 = vmul.f32 %v684_v4, %v2535_v54  ;;  %v759_v43 = vpack.c.bf16 %v2911_v6, %v2915_v18  ;;  %v2691_v44 = vadd.f32 %v2596_v47, %v713_v24  ;;  %v2195_v24 = vld [vmem:[#allocation10 + $0x38] sm:$0xff]  }
 0x2d5   :  { %v1995_v17 = vpop.f32.mrf.mxu0  ;;  %2060 = vmatprep.subr.bf16.mxu1 %v2195_v24 }
 0x2d6   :  { %v714_v27 = vmul.f32 %v1995_v17, %v2537_v55  ;;  %v758_v38 = vpack.c.bf16 %v2910_v8, %v2912_v13  ;;  %v2680_v39 = vadd.f32 %v2596_v47, %v711_v10  ;;  %v2914_v10 = vmax.f32 %v2691_v44, 0.0  ;;  %2061 = vmatpush3.bf16.msra.mxu1 %v2195_v24 }
 0x2d7   :  { %v687_v33 = vpop.f32.mrf.mxu0 }
 0x2d8   :  { %v2683_v41 = vadd.f32 %v2596_v47, %v714_v27  ;;  %v712_v42 = vmul.f32 %v687_v33, %v2541_v59  ;;  %2020 = vmatprep.mubr.bf16.mxu1 %v758_v38  ;;  %v2909_v48 = vmax.f32 %v2680_v39, 0.0  ;;  %v2196_v27 = vld [vmem:[#allocation10 + $0x30] sm:$0xff]   ;;  %v2197_v33 = vld [vmem:[#allocation10 + $0x28] sm:$0xff]  }
 0x2d9   :  { %2021 = vmatmul.mubr.bf16.gmra.mxu1 %v759_v43  ;;  %2062 = vmatprep.subr.bf16.mxu1 %v2196_v27 }
 0x2da   :  { %2926 = vst [vmem:[#allocation19_spill] sm:$0xff] %v2683_v41  ;;  %v2694_v46 = vadd.f32 %v2596_v47, %v712_v42  ;;  %v2913_v53 = vmax.f32 %v2683_v41, 0.0  ;;  %2063 = vmatpush3.bf16.msra.mxu1 %v2196_v27 }
 0x2db   :  { %2064 = vmatprep.subr.bf16.mxu1 %v2197_v33 }
 0x2dc   :  { %2927 = vst [vmem:[#allocation20_spill] sm:$0xff] %v2694_v46  ;;  %v2908_v4 = vmax.f32 %v2694_v46, 0.0  ;;  %v761_v47 = vpack.c.bf16 %v2913_v53, %v2914_v10 }
 0x2de   :  { %v760_v17 = vpack.c.bf16 %v2908_v4, %v2909_v48  ;;  %2065 = vmatpush3.bf16.msra.mxu1 %v2197_v33 }
 0x2e0   :  { %2024 = vmatprep.mubr.bf16.mxu1 %v760_v17 }
 0x2e1   :  { %2025 = vmatmul.mubr.bf16.gmra.mxu1 %v761_v47 }
 0x389   :  { %v2014_v38 = vpop.f32.mrf.mxu1 }
 0x38b   :  { %v860_v42 = vpop.f32.mrf.mxu1 }
 0x38d   :  { %v2015_v43 = vpop.f32.mrf.mxu1 }
 0x38f   :  { %v863_v4 = vpop.f32.mrf.mxu1 }
 0x391   :  { %v2018_v17 = vpop.f32.mrf.mxu1 }
 0x393   :  { %v876_v48 = vpop.f32.mrf.mxu1 }
 0x395   :  { %v2019_v8 = vpop.f32.mrf.mxu1 }
 0x397   :  { %v879_v6 = vpop.f32.mrf.mxu1 }
 0x399   :  { %v2022_v13 = vpop.f32.mrf.mxu1 }
 0x39a   :  { %v933_v3 = vmul.f32 %v2022_v13, %v2545_v63  ;;  %v924_v13 = vmul.f32 %v863_v4, %v2577_v34 }
 0x39b   :  { %v892_v53 = vpop.f32.mrf.mxu1 }
 0x39d   :  { %v2023_v47 = vpop.f32.mrf.mxu1 }
 0x39e   :  { %v934_v60 = vmul.f32 %v2023_v47, %v2547_v2 }
 0x39f   :  { %v895_v10 = vpop.f32.mrf.mxu1 }
 0x3a0   :  { %v944_v46 = vpack.c.bf16 %v934_v60, %v933_v3  ;;  %v932_v41 = vmul.f32 %v895_v10, %v2553_v7  ;;  %v926_v60 = vmul.f32 %v2015_v43, %v2571_v28  ;;  %v925_v3 = vmul.f32 %v2014_v38, %v2569_v26 }
 0x3a1   :  { %v2026_v18 = vpop.f32.mrf.mxu1 }
 0x3a2   :  { %v937_v37 = vmul.f32 %v2026_v18, %v2533_v52  ;;  %v931_v18 = vmul.f32 %v892_v53, %v2551_v5 }
 0x3a3   :  { %v908_v36 = vpop.f32.mrf.mxu1 }
 0x3a4   :  { %v935_v35 = vmul.f32 %v908_v36, %v2535_v54  ;;  %v930_v36 = vmul.f32 %v2019_v8, %v2559_v16  ;;  %v940_v8 = vpack.c.bf16 %v926_v60, %v925_v3 }
 0x3a5   :  { %v2027_v24 = vpop.f32.mrf.mxu1 }
 0x3a6   :  { %v938_v27 = vmul.f32 %v2027_v24, %v2537_v55  ;;  %v929_v24 = vmul.f32 %v2018_v17, %v2557_v12  ;;  %v2928_v17 = vmax.f32 %v2607_v56, 0.0  ;;  %v2931_v56 = vmax.f32 %v2610_v58, 0.0 }
 0x3a7   :  { %v911_v33 = vpop.f32.mrf.mxu1 }
 0x3a8   :  { %v946_v40 = vpack.c.bf16 %v938_v27, %v937_v37  ;;  %v936_v0 = vmul.f32 %v911_v33, %v2541_v59  ;;  %v943_v37 = vpack.c.bf16 %v932_v41, %v931_v18  ;;  %v923_v41 = vmul.f32 %v860_v42, %v2575_v32 }
 0x3a9   :  { %v1085_v47 = vmul.f32 0.6, %v2928_v17 }
 0x3aa   :  { %v945_v62 = vpack.c.bf16 %v936_v0, %v935_v35  ;;  %2028 = vmatprep.subr.bf16.mxu0 %v946_v40  ;;  %v942_v0 = vpack.c.bf16 %v930_v36, %v929_v24  ;;  %v928_v35 = vmul.f32 %v879_v6, %v2565_v22  ;;  %v2198_v6 = vld [vmem:[#allocation10 + $0x20] sm:$0xff]  }
 0x3ab   :  { %2029 = vmatpush3.bf16.msra.mxu0 %v946_v40  ;;  %v927_v40 = vmul.f32 %v876_v48, %v2563_v19  ;;  %2066 = vmatprep.subr.bf16.mxu1 %v2198_v6  ;;  %v2199_v48 = vld [vmem:[#allocation10 + $0x18] sm:$0xff]  }
 0x3ac   :  { %2030 = vmatprep.subr.bf16.mxu0 %v945_v62  ;;  %2067 = vmatpush3.bf16.msra.mxu1 %v2198_v6 }
 0x3ad   :  { %2068 = vmatprep.subr.bf16.mxu1 %v2199_v48 }
 0x3af   :  { %2031 = vmatpush3.bf16.msra.mxu0 %v945_v62  ;;  %v941_v62 = vpack.c.bf16 %v928_v35, %v927_v40  ;;  %v2930_v40 = vmax.f32 %v2603_v51, 0.0 }
 0x3b0   :  { %2032 = vmatprep.subr.bf16.mxu0 %v944_v46  ;;  %2069 = vmatpush3.bf16.msra.mxu1 %v2199_v48 }
 0x3b1   :  { %v1086_v60 = vmul.f32 0.6, %v2930_v40 }
 0x3b3   :  { %2033 = vmatpush3.bf16.msra.mxu0 %v944_v46  ;;  %v939_v46 = vpack.c.bf16 %v924_v13, %v923_v41 }
 0x3b4   :  { %2034 = vmatprep.subr.bf16.mxu0 %v943_v37 }
 0x3b7   :  { %2035 = vmatpush3.bf16.msra.mxu0 %v943_v37 }
 0x3b8   :  { %2036 = vmatprep.subr.bf16.mxu0 %v942_v0 }
 0x3bb   :  { %2037 = vmatpush3.bf16.msra.mxu0 %v942_v0  ;;  %v2929_v0 = vmax.f32 %v2600_v50, 0.0 }
 0x3bc   :  { %2038 = vmatprep.subr.bf16.mxu0 %v941_v62 }
 0x3bd   :  { %v1083_v35 = vmul.f32 0.6, %v2929_v0 }
 0x3bf   :  { %2039 = vmatpush3.bf16.msra.mxu0 %v941_v62 }
 0x3c0   :  { %2040 = vmatprep.subr.bf16.mxu0 %v940_v8 }
 0x3c3   :  { %2041 = vmatpush3.bf16.msra.mxu0 %v940_v8  ;;  %v1084_v8 = vmul.f32 0.6, %v2931_v56 }
 0x3c4   :  { %2042 = vmatprep.subr.bf16.mxu0 %v939_v46 }
 0x3c7   :  { %2043 = vmatpush3.bf16.msra.mxu0 %v939_v46 }
 0x3ca   :  { %2045 = vmatmul.mubr.bf16.vlgmr.msra.gmra.mxu0 %v2507_v9  ;;  %v2200_v9 = vld [vmem:[#allocation10 + $0x10] sm:$0xff]  }
 0x3cb   :  { %2048 = vmatprep.mubr.bf16.mxu0 %v2509_v11  ;;  %2070 = vmatprep.subr.bf16.mxu1 %v2200_v9  ;;  %v2201_v11 = vld [vmem:[#allocation10 + $0x8] sm:$0xff]  }
 0x3cc   :  { %2071 = vmatpush3.bf16.msra.mxu1 %v2200_v9 }
 0x3cd   :  { %2072 = vmatprep.subr.bf16.mxu1 %v2201_v11 }
 0x3d0   :  { %2073 = vmatpush3.bf16.msra.mxu1 %v2201_v11 }
 0x3d2   :  { %2049 = vmatmul.mubr.bf16.gmra.mxu0 %v2513_v14  ;;  %v2202_v14 = vld [vmem:[#allocation10] sm:$0xff]  }
 0x3d3   :  { %2052 = vmatprep.mubr.bf16.mxu0 %v2515_v15  ;;  %2074 = vmatprep.subr.bf16.mxu1 %v2202_v14  ;;  %v2732_v15 = vld [vmem:[#allocation11 + $0x38] sm:$0xff]  }
 0x3d4   :  { %2075 = vmatpush3.bf16.msra.mxu1 %v2202_v14 }
 0x3d5   :  { %2124 = vmatprep.subr.bf16.mxu1 %v2732_v15 }
 0x3da   :  { %2053 = vmatmul.mubr.bf16.gmra.mxu0 %v2519_v21  ;;  %v2738_v21 = vld [vmem:[%s2902_s5] ss:$0 sm:$0xff] }
 0x3db   :  { %2056 = vmatprep.mubr.bf16.mxu0 %v2521_v23 }
 0x3e2   :  { %2057 = vmatmul.mubr.bf16.gmra.mxu0 %v2525_v29 }
 0x3e3   :  { %2108 = vmatprep.mubr.bf16.mxu0 %v2504_v1 }
 0x48a   :  { %v2046_v1 = vpop.f32.mrf.mxu0 }
 0x48b   :  { %v1046_v23 = vmul.f32 %v2046_v1, %v2569_v26 }
 0x48c   :  { %v981_v29 = vpop.f32.mrf.mxu0 }
 0x48d   :  { %v1069_v53 = vadd.f32 %v2738_v21, %v1046_v23  ;;  %v1044_v4 = vmul.f32 %v981_v29, %v2575_v32 }
 0x48e   :  { %v2047_v10 = vpop.f32.mrf.mxu0 }
 0x48f   :  { %v1101_v38 = vmul.f32 0.4, %v1069_v53  ;;  %v1067_v42 = vadd.f32 %v2738_v21, %v1044_v4  ;;  %v1047_v43 = vmul.f32 %v2047_v10, %v2571_v28 }
 0x490   :  { %v984_v27 = vpop.f32.mrf.mxu0 }
 0x491   :  { %v1099_v33 = vmul.f32 0.4, %v1067_v42  ;;  %v1070_v18 = vadd.f32 %v2738_v21, %v1047_v43  ;;  %v1045_v36 = vmul.f32 %v984_v27, %v2577_v34  ;;  %v1117_v37 = vadd.f32 %v1101_v38, %v1085_v47 }
 0x492   :  { %v2050_v24 = vpop.f32.mrf.mxu0  ;;  %v2932_v43 = vmax.f32 %v2635_v30, 0.0 }
 0x493   :  { %v1102_v62 = vmul.f32 0.4, %v1070_v18  ;;  %v1068_v3 = vadd.f32 %v2738_v21, %v1045_v36  ;;  %v1050_v13 = vmul.f32 %v2050_v24, %v2557_v12  ;;  %v1115_v46 = vadd.f32 %v1099_v33, %v1083_v35 }
 0x494   :  { %v997_v41 = vpop.f32.mrf.mxu0  ;;  %v1133_v11 = vmax.f32 %v1117_v37, 0.0  ;;  %v1089_v17 = vmul.f32 0.6, %v2932_v43  ;;  %v2933_v18 = vmax.f32 %v2628_v20, 0.0  ;;  %v2934_v35 = vmax.f32 %v2632_v25, 0.0 }
 0x495   :  { %v1118_v6 = vadd.f32 %v1102_v62, %v1086_v60  ;;  %v1100_v48 = vmul.f32 0.4, %v1068_v3  ;;  %v1048_v9 = vmul.f32 %v997_v41, %v2563_v19  ;;  %v1073_v50 = vadd.f32 %v2738_v21, %v1050_v13  ;;  %v2204_v3 = vld [vmem:[#allocation11 + $0x30] sm:$0xff]  }
 0x496   :  { %v2051_v14 = vpop.f32.mrf.mxu0  ;;  %v1131_v4 = vmax.f32 %v1115_v46, 0.0  ;;  %v1090_v36 = vmul.f32 0.6, %v2933_v18  ;;  %v1087_v40 = vmul.f32 0.6, %v2934_v35  ;;  %v2935_v20 = vmax.f32 %v2638_v31, 0.0 }
 0x497   :  { %v1134_v51 = vmax.f32 %v1118_v6, 0.0  ;;  %v1116_v1 = vadd.f32 %v1100_v48, %v1084_v8  ;;  %v1071_v23 = vadd.f32 %v2738_v21, %v1048_v9  ;;  %v1051_v29 = vmul.f32 %v2051_v14, %v2559_v16 }
 0x498   :  { %v1105_v58 = vmul.f32 0.4, %v1073_v50  ;;  %v1000_v53 = vpop.f32.mrf.mxu0  ;;  %v1088_v41 = vmul.f32 0.6, %v2935_v20  ;;  %v2936_v31 = vmax.f32 %v2663_v57, 0.0 }
 0x499   :  { %v2761_v10 = vpack.c.bf16 %v1134_v51, %v1133_v11  ;;  %v1132_v38 = vmax.f32 %v1116_v1, 0.0  ;;  %v1074_v42 = vadd.f32 %v2738_v21, %v1051_v29  ;;  %v1103_v47 = vmul.f32 0.4, %v1071_v23  ;;  %v2205_v23 = vld [vmem:[#allocation11 + $0x28] sm:$0xff]  }
 0x49a   :  { %v1049_v27 = vmul.f32 %v1000_v53, %v2565_v22  ;;  %v2054_v33 = vpop.f32.mrf.mxu0  ;;  %v1121_v60 = vadd.f32 %v1105_v58, %v1089_v17  ;;  %v1093_v29 = vmul.f32 0.6, %v2936_v31  ;;  %v2207_v31 = vld [vmem:[#allocation11 + $0x18] sm:$0xff]  }
 0x49b   :  { %v1106_v37 = vmul.f32 0.4, %v1074_v42  ;;  %v1054_v24 = vmul.f32 %v2054_v33, %v2545_v63  ;;  %v2770_v0 = vpack.c.bf16 %v1132_v38, %v1131_v4  ;;  %v1119_v46 = vadd.f32 %v1103_v47, %v1087_v40 }
 0x49c   :  { %v1072_v62 = vadd.f32 %v2738_v21, %v1049_v27  ;;  %v1013_v30 = vpop.f32.mrf.mxu0  ;;  %v1137_v50 = vmax.f32 %v1121_v60, 0.0  ;;  %v2937_v38 = vmax.f32 %v2660_v49, 0.0  ;;  %v2938_v27 = vmax.f32 %v2652_v45, 0.0  ;;  %v2206_v45 = vld [vmem:[#allocation11 + $0x20] sm:$0xff]  }
 0x49d   :  { %v1122_v56 = vadd.f32 %v1106_v37, %v1090_v36  ;;  %v1077_v8 = vadd.f32 %v2738_v21, %v1054_v24  ;;  %v1052_v13 = vmul.f32 %v1013_v30, %v2551_v5  ;;  %2076 = vmatprep.mubr.bf16.mxu1 %v2770_v0  ;;  %v1135_v43 = vmax.f32 %v1119_v46, 0.0 }
 0x49e   :  { %v1104_v6 = vmul.f32 0.4, %v1072_v62  ;;  %v2055_v48 = vpop.f32.mrf.mxu0  ;;  %2077 = vmatmul.mubr.bf16.vlgmr.msra.gmra.mxu1 %v2761_v10  ;;  %v1091_v42 = vmul.f32 0.6, %v2937_v38  ;;  %v1094_v33 = vmul.f32 0.6, %v2938_v27 }
 0x49f   :  { %v1138_v25 = vmax.f32 %v1122_v56, 0.0  ;;  %v1075_v9 = vadd.f32 %v2738_v21, %v1052_v13  ;;  %v1055_v11 = vmul.f32 %v2055_v48, %v2547_v2  ;;  %2125 = vmatpush3.bf16.msra.mxu1 %v2732_v15  ;;  %v1109_v51 = vmul.f32 0.4, %v1077_v8 }
 0x4a0   :  { %v1120_v14 = vadd.f32 %v1104_v6, %v1088_v41  ;;  %v1016_v1 = vpop.f32.mrf.mxu0  ;;  %2126 = vmatprep.subr.bf16.mxu1 %v2204_v3  ;;  %v2939_v49 = vmax.f32 %v2666_v61, 0.0  ;;  %v2940_v61 = vmax.f32 %v2691_v44, 0.0 }
 0x4a1   :  { %v1107_v58 = vmul.f32 0.4, %v1075_v9  ;;  %v1078_v53 = vadd.f32 %v2738_v21, %v1055_v11  ;;  %v1053_v4 = vmul.f32 %v1016_v1, %v2553_v7  ;;  %v2790_v47 = vpack.c.bf16 %v1138_v25, %v1137_v50 }
 0x4a2   :  { %v1136_v17 = vmax.f32 %v1120_v14, 0.0  ;;  %v2058_v15 = vpop.f32.mrf.mxu0  ;;  %v1125_v36 = vadd.f32 %v1109_v51, %v1093_v29  ;;  %v1092_v60 = vmul.f32 0.6, %v2939_v49  ;;  %v1097_v6 = vmul.f32 0.6, %v2940_v61 }
 0x4a3   :  { %v1110_v18 = vmul.f32 0.4, %v1078_v53  ;;  %v1076_v57 = vadd.f32 %v2738_v21, %v1053_v4  ;;  %2127 = vmatpush3.bf16.msra.mxu1 %v2204_v3  ;;  %v1123_v37 = vadd.f32 %v1107_v58, %v1091_v42  ;;  %v1058_v24 = vmul.f32 %v2058_v15, %v2533_v52  ;;  %v2942_v53 = vld [vmem:[#allocation19_spill] sm:$0xff]  ;;  %v2944_v15 = vld [vmem:[#allocation20_spill] sm:$0xff] }
 0x4a4   :  { %v1029_v35 = vpop.f32.mrf.mxu0  ;;  %v1149_v40 = vpack.c.bf16 %v1136_v17, %v1135_v43  ;;  %2128 = vmatprep.subr.bf16.mxu1 %v2205_v23  ;;  %v1141_v48 = vmax.f32 %v1125_v36, 0.0  ;;  %v2941_v29 = vmax.f32 %v2680_v39, 0.0  ;;  %v2943_v4 = vmax.f32 %v2942_v53, 0.0  ;;  %v2208_v39 = vld [vmem:[#allocation11 + $0x10] sm:$0xff]  }
 0x4a5   :  { %v1126_v62 = vadd.f32 %v1110_v18, %v1094_v33  ;;  %v1108_v30 = vmul.f32 0.4, %v1076_v57  ;;  %v1056_v56 = vmul.f32 %v1029_v35, %v2535_v54  ;;  %v1081_v8 = vadd.f32 %v2738_v21, %v1058_v24 }
 0x4a6   :  { %2080 = vmatprep.mubr.bf16.mxu1 %v1149_v40  ;;  %v2059_v13 = vpop.f32.mrf.mxu0  ;;  %v1139_v25 = vmax.f32 %v1123_v37, 0.0  ;;  %v1095_v58 = vmul.f32 0.6, %v2941_v29  ;;  %v1098_v44 = vmul.f32 0.6, %v2943_v4  ;;  %v2945_v27 = vmax.f32 %v2944_v15, 0.0 }
 0x4a7   :  { %v1142_v3 = vmax.f32 %v1126_v62, 0.0  ;;  %v1124_v20 = vadd.f32 %v1108_v30, %v1092_v60  ;;  %v1079_v41 = vadd.f32 %v2738_v21, %v1056_v56  ;;  %v1059_v46 = vmul.f32 %v2059_v13, %v2537_v55  ;;  %2081 = vmatmul.mubr.bf16.gmra.mxu1 %v2790_v47  ;;  %v2209_v62 = vld [vmem:[#allocation11 + $0x8] sm:$0xff]   ;;  %v2210_v56 = vld [vmem:[#allocation11] sm:$0xff]  }
 0x4a8   :  { %v1113_v9 = vmul.f32 0.4, %v1081_v8  ;;  %2129 = vmatpush3.bf16.msra.mxu1 %v2205_v23  ;;  %v1032_v11 = vpop.f32.mrf.mxu0  ;;  %v1096_v33 = vmul.f32 0.6, %v2945_v27 }
 0x4a9   :  { %v1140_v50 = vmax.f32 %v1124_v20, 0.0  ;;  %v1111_v14 = vmul.f32 0.4, %v1079_v41  ;;  %v1082_v51 = vadd.f32 %v2738_v21, %v1059_v46  ;;  %v1057_v1 = vmul.f32 %v1032_v11, %v2541_v59  ;;  %2130 = vmatprep.subr.bf16.mxu1 %v2206_v45 }
 0x4aa   :  { %v1152_v38 = vpack.c.bf16 %v1142_v3, %v1141_v48  ;;  %v1129_v42 = vadd.f32 %v1113_v9, %v1097_v6 }
 0x4ab   :  { %v1114_v43 = vmul.f32 0.4, %v1082_v51  ;;  %v1080_v23 = vadd.f32 %v2738_v21, %v1057_v1  ;;  %v1151_v17 = vpack.c.bf16 %v1140_v50, %v1139_v25  ;;  %v1127_v18 = vadd.f32 %v1111_v14, %v1095_v58 }
 0x4ac   :  { %2131 = vmatpush3.bf16.msra.mxu1 %v2206_v45  ;;  %v1145_v37 = vmax.f32 %v1129_v42, 0.0 }
 0x4ad   :  { %v1130_v57 = vadd.f32 %v1114_v43, %v1098_v44  ;;  %v1112_v36 = vmul.f32 0.4, %v1080_v23  ;;  %2084 = vmatprep.mubr.bf16.mxu1 %v1151_v17  ;;  %2132 = vmatprep.subr.bf16.mxu1 %v2207_v31  ;;  %v1143_v49 = vmax.f32 %v1127_v18, 0.0 }
 0x4af   :  { %v1146_v24 = vmax.f32 %v1130_v57, 0.0  ;;  %v1128_v35 = vadd.f32 %v1112_v36, %v1096_v33  ;;  %2085 = vmatmul.mubr.bf16.gmra.mxu1 %v1152_v38 }
 0x4b0   :  { %2133 = vmatpush3.bf16.msra.mxu1 %v2207_v31 }
 0x4b1   :  { %v1144_v60 = vmax.f32 %v1128_v35, 0.0  ;;  %2134 = vmatprep.subr.bf16.mxu1 %v2208_v39  ;;  %v1154_v21 = vpack.c.bf16 %v1146_v24, %v1145_v37  ;;  %v2243_v24 = vld [vmem:[#allocation2 + $0x8] sm:$0xff]   ;;  %v2244_v35 = vld [vmem:[#allocation2 + $0x10] sm:$0xff]  }
 0x4b3   :  { %v1153_v30 = vpack.c.bf16 %v1144_v60, %v1143_v49  ;;  %v2245_v49 = vld [vmem:[#allocation2 + $0x18] sm:$0xff]   ;;  %v2246_v60 = vld [vmem:[#allocation2 + $0x20] sm:$0xff]  }
 0x4b4   :  { %2135 = vmatpush3.bf16.msra.mxu1 %v2208_v39 }
 0x4b5   :  { %2088 = vmatprep.mubr.bf16.mxu1 %v1153_v30  ;;  %2136 = vmatprep.subr.bf16.mxu1 %v2209_v62 }
 0x4b7   :  { %2089 = vmatmul.mubr.bf16.gmra.mxu1 %v1154_v21 }
 0x4b8   :  { %2137 = vmatpush3.bf16.msra.mxu1 %v2209_v62  ;;  %2140 = vmatprep.mubr.bf16.mxu1 %v2770_v0  ;;  %v2248_v62 = vld [vmem:[#allocation2 + $0x30] sm:$0xff]  }
 0x4b9   :  { %2138 = vmatprep.subr.bf16.mxu1 %v2210_v56 }
 0x4bc   :  { %2139 = vmatpush3.bf16.msra.mxu1 %v2210_v56 }
 0x4bf   :  { %2141 = vmatmul.mubr.bf16.vlgmr.msra.gmra.mxu1 %v2761_v10 }
 0x4c0   :  { %2144 = vmatprep.mubr.bf16.mxu1 %v1149_v40 }
 0x4c7   :  { %2145 = vmatmul.mubr.bf16.gmra.mxu1 %v2790_v47 }
 0x4c8   :  { %2148 = vmatprep.mubr.bf16.mxu1 %v1151_v17 }
 0x4cf   :  { %2149 = vmatmul.mubr.bf16.gmra.mxu1 %v1152_v38 }
 0x4d0   :  { %2152 = vmatprep.mubr.bf16.mxu1 %v1153_v30  ;;  %v2249_v30 = vld [vmem:[#allocation2 + $0x38] sm:$0xff]  }
 0x4d7   :  { %2153 = vmatmul.mubr.bf16.gmra.mxu1 %v1154_v21  ;;  %v2247_v21 = vld [vmem:[#allocation2 + $0x28] sm:$0xff]  }
 0x55e   :  { %v2078_v45 = vpop.f32.mrf.mxu1 }
 0x55f   :  { %v1318_v18 = vmul.f32 %v2078_v45, %v2569_v26 }
 0x560   :  { %v1253_v8 = vpop.f32.mrf.mxu1 }
 0x561   :  { %v1316_v39 = vmul.f32 %v1253_v8, %v2575_v32 }
 0x562   :  { %v2079_v13 = vpop.f32.mrf.mxu1 }
 0x563   :  { %v1319_v27 = vmul.f32 %v2079_v13, %v2571_v28 }
 0x564   :  { %v1256_v3 = vpop.f32.mrf.mxu1 }
 0x565   :  { %v1333_v57 = vpack.c.bf16 %v1319_v27, %v1318_v18  ;;  %v1317_v36 = vmul.f32 %v1256_v3, %v2577_v34 }
 0x567   :  { %v2082_v20 = vpop.f32.mrf.mxu1  ;;  %v1332_v37 = vpack.c.bf16 %v1317_v36, %v1316_v39 }
 0x568   :  { %v1322_v43 = vmul.f32 %v2082_v20, %v2557_v12 }
 0x569   :  { %v1269_v41 = vpop.f32.mrf.mxu1 }
 0x56a   :  { %v1320_v15 = vmul.f32 %v1269_v41, %v2563_v19 }
 0x56b   :  { %v2083_v46 = vpop.f32.mrf.mxu1 }
 0x56c   :  { %v1323_v38 = vmul.f32 %v2083_v46, %v2559_v16 }
 0x56d   :  { %v1272_v61 = vpop.f32.mrf.mxu1 }
 0x56e   :  { %v1335_v23 = vpack.c.bf16 %v1323_v38, %v1322_v43  ;;  %v1321_v17 = vmul.f32 %v1272_v61, %v2565_v22  ;;  %v2836_v61 = vld [vmem:[%s2906_s9] ss:$0 sm:$0xff] }
 0x56f   :  { %v2086_v0 = vpop.f32.mrf.mxu1 }
 0x570   :  { %v1326_v58 = vmul.f32 %v2086_v0, %v2545_v63  ;;  %v1334_v33 = vpack.c.bf16 %v1321_v17, %v1320_v15 }
 0x571   :  { %v1285_v6 = vpop.f32.mrf.mxu1 }
 0x572   :  { %v1324_v44 = vmul.f32 %v1285_v6, %v2551_v5 }
 0x573   :  { %v2087_v48 = vpop.f32.mrf.mxu1 }
 0x574   :  { %v1327_v31 = vmul.f32 %v2087_v48, %v2547_v2  ;;  %v2841_v48 = vld [vmem:[%s2904_s7] ss:$0 sm:$0xff]  ;;  %s2412_s7 = smov [#allocation13]  }
 0x575   :  { %v1288_v25 = vpop.f32.mrf.mxu1  ;;  %s1713_s9 = sshll.u32 %s2412_s7, 4  ;;  %s1714_s9 = int_to_ptr.vmem [resolvable:$true] %s1713_s9 }
 0x576   :  { %v1337_v53 = vpack.c.bf16 %v1327_v31, %v1326_v58  ;;  %v1325_v4 = vmul.f32 %v1288_v25, %v2553_v7  ;;  %s2370_s1 = scalar_lea.vmem %s1714_s9, 2048  ;;  %p2375_p3 = scmp.lt.s32.totalorder %s1714_s9, %s1714_s9 }
 0x577   :  { %v2090_v10 = vpop.f32.mrf.mxu1  ;;  %p2371_p2 = scmp.ne.s32.totalorder %s1714_s9, %s2370_s1  ;;  %p2376_p4 = scmp.lt.s32.totalorder %s2370_s1, %s2370_s1 }
 0x578   :  { %v1330_v47 = vmul.f32 %v2090_v10, %v2533_v52  ;;  %v1336_v42 = vpack.c.bf16 %v1325_v4, %v1324_v44 }
 0x579   :  { %v1301_v40 = vpop.f32.mrf.mxu1  ;;  %p2377_p5 = por %p2376_p4, %p2375_p3 }
 0x57a   :  { %v1328_v14 = vmul.f32 %v1301_v40, %v2535_v54 }
 0x57b   :  { %v2091_v9 = vpop.f32.mrf.mxu1  ;;  %p2378_p6 = pnand %p2377_p5, %p2371_p2 }
 0x57c   :  { %v1331_v11 = vmul.f32 %v2091_v9, %v2537_v55 }
 0x57d   :  { %v1304_v50 = vpop.f32.mrf.mxu1 }
 0x57e   :  { %v1339_v51 = vpack.c.bf16 %v1331_v11, %v1330_v47  ;;  %v1329_v1 = vmul.f32 %v1304_v50, %v2541_v59 }
 0x57f   :  { %v2142_v56 = vpop.f32.mrf.mxu1 }
 0x580   :  { %v1338_v29 = vpack.c.bf16 %v1329_v1, %v1328_v14  ;;  %2092 = vmatprep.subr.bf16.mxu0 %v1339_v51  ;;  %v1590_v25 = vadd.f32 %v2142_v56, %v2836_v61 }
 0x581   :  { %2093 = vmatpush3.bf16.msra.mxu0 %v1339_v51  ;;  %v1581_v45 = vpop.f32.mrf.mxu1 }
 0x582   :  { %2094 = vmatprep.subr.bf16.mxu0 %v1338_v29  ;;  %v1582_v40 = vadd.f32 %v2836_v61, %v1581_v45  ;;  %v1646_v1 = vmul.f32 0.6, %v1590_v25 }
 0x583   :  { %v2143_v8 = vpop.f32.mrf.mxu1 }
 0x584   :  { %v1593_v14 = vadd.f32 %v2143_v8, %v2836_v61 }
 0x585   :  { %2095 = vmatpush3.bf16.msra.mxu0 %v1338_v29  ;;  %v1584_v13 = vpop.f32.mrf.mxu1 }
 0x586   :  { %2096 = vmatprep.subr.bf16.mxu0 %v1337_v53 }
 0x587   :  { %v2146_v3 = vpop.f32.mrf.mxu1 }
 0x588   :  { %v1606_v17 = vadd.f32 %v2146_v3, %v2836_v61 }
 0x589   :  { %2097 = vmatpush3.bf16.msra.mxu0 %v1337_v53  ;;  %v1597_v20 = vpop.f32.mrf.mxu1  ;;  %v1644_v53 = vmul.f32 0.6, %v1582_v40 }
 0x58a   :  { %2098 = vmatprep.subr.bf16.mxu0 %v1336_v42  ;;  %v1598_v36 = vadd.f32 %v2836_v61, %v1597_v20 }
 0x58b   :  { %v2147_v41 = vpop.f32.mrf.mxu1 }
 0x58c   :  { %v1648_v8 = vmul.f32 0.6, %v1598_v36 }
 0x58d   :  { %2099 = vmatpush3.bf16.msra.mxu0 %v1336_v42  ;;  %v1600_v46 = vpop.f32.mrf.mxu1 }
 0x58e   :  { %2100 = vmatprep.subr.bf16.mxu0 %v1335_v23 }
 0x58f   :  { %v2150_v0 = vpop.f32.mrf.mxu1 }
 0x590   :  { %v1622_v40 = vadd.f32 %v2150_v0, %v2836_v61 }
 0x591   :  { %2101 = vmatpush3.bf16.msra.mxu0 %v1335_v23  ;;  %v1613_v47 = vpop.f32.mrf.mxu1  ;;  %v1647_v23 = vmul.f32 0.6, %v1593_v14 }
 0x592   :  { %2102 = vmatprep.subr.bf16.mxu0 %v1334_v33 }
 0x593   :  { %v2151_v44 = vpop.f32.mrf.mxu1 }
 0x595   :  { %2103 = vmatpush3.bf16.msra.mxu0 %v1334_v33 }
 0x596   :  { %2104 = vmatprep.subr.bf16.mxu0 %v1333_v57 }
 0x599   :  { %2105 = vmatpush3.bf16.msra.mxu0 %v1333_v57 }
 0x59a   :  { %2106 = vmatprep.subr.bf16.mxu0 %v1332_v37 }
 0x59d   :  { %2107 = vmatpush3.bf16.msra.mxu0 %v1332_v37  ;;  %v1616_v37 = vpop.f32.mrf.mxu1 }
 0x59f   :  { %v2154_v20 = vpop.f32.mrf.mxu1 }
 0x5a0   :  { %2109 = vmatmul.mubr.bf16.vlgmr.msra.gmra.mxu0 %v2243_v24 }
 0x5a1   :  { %2112 = vmatprep.mubr.bf16.mxu0 %v2244_v35 }
 0x5a8   :  { %2113 = vmatmul.mubr.bf16.gmra.mxu0 %v2245_v49 }
 0x5a9   :  { %2116 = vmatprep.mubr.bf16.mxu0 %v2246_v60  ;;  %v1650_v60 = vmul.f32 0.6, %v1606_v17 }
 0x5b0   :  { %2117 = vmatmul.mubr.bf16.gmra.mxu0 %v2247_v21  ;;  %v1609_v21 = vadd.f32 %v2147_v41, %v2836_v61 }
 0x5b1   :  { %2120 = vmatprep.mubr.bf16.mxu0 %v2248_v62 }
 0x5b8   :  { %2121 = vmatmul.mubr.bf16.gmra.mxu0 %v2249_v30 }
 0x660   :  { %v2110_v6 = vpop.f32.mrf.mxu0 }
 0x661   :  { %v1439_v10 = vmul.f32 %v2110_v6, %v2569_v26  ;;  %v1585_v26 = vadd.f32 %v2836_v61, %v1584_v13  ;;  %v1601_v13 = vadd.f32 %v2836_v61, %v1600_v46 }
 0x662   :  { %v1374_v9 = vpop.f32.mrf.mxu0 }
 0x663   :  { %v1462_v11 = vadd.f32 %v2841_v48, %v1439_v10  ;;  %v1437_v50 = vmul.f32 %v1374_v9, %v2575_v32  ;;  %v1645_v57 = vmul.f32 0.6, %v1585_v26  ;;  %v1651_v10 = vmul.f32 0.6, %v1609_v21 }
 0x664   :  { %v2111_v51 = vpop.f32.mrf.mxu0  ;;  %v1649_v14 = vmul.f32 0.6, %v1601_v13  ;;  %v1625_v26 = vadd.f32 %v2151_v44, %v2836_v61 }
 0x665   :  { %v1662_v31 = vmul.f32 0.4, %v1462_v11  ;;  %v1460_v29 = vadd.f32 %v2841_v48, %v1437_v50  ;;  %v1440_v58 = vmul.f32 %v2111_v51, %v2571_v28  ;;  %v1614_v51 = vadd.f32 %v2836_v61, %v1613_v47 }
 0x666   :  { %v1377_v4 = vpop.f32.mrf.mxu0 }
 0x667   :  { %v1678_v38 = vadd.f32 %v1662_v31, %v1646_v1  ;;  %v1660_v42 = vmul.f32 0.4, %v1460_v29  ;;  %v1463_v43 = vadd.f32 %v2841_v48, %v1440_v58  ;;  %v1438_v32 = vmul.f32 %v1377_v4, %v2577_v34  ;;  %v1629_v31 = vpop.f32.mrf.mxu1 }
 0x668   :  { %v2114_v15 = vpop.f32.mrf.mxu0 }
 0x669   :  { %1694 = vst [vmem:[#allocation13 + $0x10] sm:$0xff] %v1678_v38  ;;  %v1676_v27 = vadd.f32 %v1660_v42, %v1644_v53  ;;  %v1663_v33 = vmul.f32 0.4, %v1463_v43  ;;  %v1461_v28 = vadd.f32 %v2841_v48, %v1438_v32  ;;  %v1443_v18 = vmul.f32 %v2114_v15, %v2557_v12  ;;  %v2155_v17 = vpop.f32.mrf.mxu1 }
 0x66a   :  { %v1390_v39 = vpop.f32.mrf.mxu0  ;;  %v1654_v53 = vmul.f32 0.6, %v1622_v40  ;;  %v1652_v43 = vmul.f32 0.6, %v1614_v51  ;;  %v1617_v32 = vadd.f32 %v2836_v61, %v1616_v37 }
 0x66b   :  { %1692 = vst [vmem:[#allocation13] sm:$0xff] %v1676_v27  ;;  %v1679_v24 = vadd.f32 %v1663_v33, %v1647_v23  ;;  %v1661_v35 = vmul.f32 0.4, %v1461_v28  ;;  %v1466_v34 = vadd.f32 %v2841_v48, %v1443_v18  ;;  %v1441_v49 = vmul.f32 %v1390_v39, %v2563_v19 }
 0x66c   :  { %v2115_v62 = vpop.f32.mrf.mxu0  ;;  %v1655_v33 = vmul.f32 0.6, %v1625_v26  ;;  %v1638_v28 = vadd.f32 %v2154_v20, %v2836_v61  ;;  %v1653_v37 = vmul.f32 0.6, %v1617_v32 }
 0x66d   :  { %1695 = vst [vmem:[#allocation13 + $0x18] sm:$0xff] %v1679_v24  ;;  %v1677_v30 = vadd.f32 %v1661_v35, %v1645_v57  ;;  %v1666_v56 = vmul.f32 0.4, %v1466_v34  ;;  %v1464_v12 = vadd.f32 %v2841_v48, %v1441_v49  ;;  %v1444_v45 = vmul.f32 %v2115_v62, %v2559_v16  ;;  %v1632_v34 = vpop.f32.mrf.mxu1 }
 0x66e   :  { %v1393_v3 = vpop.f32.mrf.mxu0  ;;  %v1630_v24 = vadd.f32 %v2836_v61, %v1629_v31  ;;  %v1658_v62 = vmul.f32 0.6, %v1638_v28 }
 0x66f   :  { %1693 = vst [vmem:[#allocation13 + $0x8] sm:$0xff] %v1677_v30  ;;  %v1682_v6 = vadd.f32 %v1666_v56, %v1650_v60  ;;  %v1664_v25 = vmul.f32 0.4, %v1464_v12  ;;  %v1467_v19 = vadd.f32 %v2841_v48, %v1444_v45  ;;  %v1442_v41 = vmul.f32 %v1393_v3, %v2565_v22 }
 0x670   :  { %v2118_v9 = vpop.f32.mrf.mxu0  ;;  %v1641_v30 = vadd.f32 %v2155_v17, %v2836_v61  ;;  %v1656_v13 = vmul.f32 0.6, %v1630_v24  ;;  %v1633_v3 = vadd.f32 %v2836_v61, %v1632_v34 }
 0x671   :  { %1698 = vst [vmem:[#allocation13 + $0x30] sm:$0xff] %v1682_v6  ;;  %v1680_v11 = vadd.f32 %v1664_v25, %v1648_v8  ;;  %v1667_v50 = vmul.f32 0.4, %v1467_v19  ;;  %v1465_v16 = vadd.f32 %v2841_v48, %v1442_v41  ;;  %v1447_v46 = vmul.f32 %v2118_v9, %v2545_v63 }
 0x672   :  { %v1406_v1 = vpop.f32.mrf.mxu0  ;;  %v1659_v41 = vmul.f32 0.6, %v1641_v30 }
 0x673   :  { %1696 = vst [vmem:[#allocation13 + $0x20] sm:$0xff] %v1680_v11  ;;  %v1683_v29 = vadd.f32 %v1667_v50, %v1651_v10  ;;  %v1665_v58 = vmul.f32 0.4, %v1465_v16  ;;  %v1470_v22 = vadd.f32 %v2841_v48, %v1447_v46  ;;  %v1445_v0 = vmul.f32 %v1406_v1, %v2551_v5 }
 0x674   :  { %v2119_v4 = vpop.f32.mrf.mxu0 }
 0x675   :  { %1699 = vst [vmem:[#allocation13 + $0x38] sm:$0xff] %v1683_v29  ;;  %v1681_v38 = vadd.f32 %v1665_v58, %v1649_v14  ;;  %v1670_v42 = vmul.f32 0.4, %v1470_v22  ;;  %v1468_v63 = vadd.f32 %v2841_v48, %v1445_v0  ;;  %v1448_v47 = vmul.f32 %v2119_v4, %v2547_v2 }
 0x676   :  { %v1409_v23 = vpop.f32.mrf.mxu0 }
 0x677   :  { %1697 = vst [vmem:[#allocation13 + $0x28] sm:$0xff] %v1681_v38  ;;  %v1686_v15 = vadd.f32 %v1670_v42, %v1654_v53  ;;  %v1668_v27 = vmul.f32 0.4, %v1468_v63  ;;  %v1471_v5 = vadd.f32 %v2841_v48, %v1448_v47  ;;  %v1446_v44 = vmul.f32 %v1409_v23, %v2553_v7 }
 0x678   :  { %v2122_v18 = vpop.f32.mrf.mxu0 }
 0x679   :  { %1702 = vst [vmem:[#allocation13 + $0x50] sm:$0xff] %v1686_v15  ;;  %v1684_v57 = vadd.f32 %v1668_v27, %v1652_v43  ;;  %v1671_v36 = vmul.f32 0.4, %v1471_v5  ;;  %v1469_v2 = vadd.f32 %v2841_v48, %v1446_v44  ;;  %v1451_v39 = vmul.f32 %v2122_v18, %v2533_v52 }
 0x67a   :  { %v1422_v35 = vpop.f32.mrf.mxu0 }
 0x67b   :  { %1700 = vst [vmem:[#allocation13 + $0x40] sm:$0xff] %v1684_v57  ;;  %v1687_v49 = vadd.f32 %v1671_v36, %v1655_v33  ;;  %v1669_v60 = vmul.f32 0.4, %v1469_v2  ;;  %v1474_v7 = vadd.f32 %v2841_v48, %v1451_v39  ;;  %v1449_v21 = vmul.f32 %v1422_v35, %v2535_v54 }
 0x67c   :  { %v2123_v56 = vpop.f32.mrf.mxu0 }
 0x67d   :  { %1703 = vst [vmem:[#allocation13 + $0x58] sm:$0xff] %v1687_v49  ;;  %v1685_v12 = vadd.f32 %v1669_v60, %v1653_v37  ;;  %v1674_v45 = vmul.f32 0.4, %v1474_v7  ;;  %v1472_v52 = vadd.f32 %v2841_v48, %v1449_v21  ;;  %v1452_v8 = vmul.f32 %v2123_v56, %v2537_v55 }
 0x67e   :  { %v1425_v20 = vpop.f32.mrf.mxu0  ;;  %v1657_v55 = vmul.f32 0.6, %v1633_v3 }
 0x67f   :  { %1701 = vst [vmem:[#allocation13 + $0x48] sm:$0xff] %v1685_v12  ;;  %v1690_v6 = vadd.f32 %v1674_v45, %v1658_v62  ;;  %v1672_v25 = vmul.f32 0.4, %v1472_v52  ;;  %v1475_v54 = vadd.f32 %v2841_v48, %v1452_v8  ;;  %v1450_v19 = vmul.f32 %v1425_v20, %v2541_v59 }
 0x681   :  { %1706 = vst [vmem:[#allocation13 + $0x70] sm:$0xff] %v1690_v6  ;;  %v1688_v10 = vadd.f32 %v1672_v25, %v1656_v13  ;;  %v1675_v40 = vmul.f32 0.4, %v1475_v54  ;;  %v1473_v9 = vadd.f32 %v2841_v48, %v1450_v19 }
 0x683   :  { %1704 = vst [vmem:[#allocation13 + $0x60] sm:$0xff] %v1688_v10  ;;  %v1691_v11 = vadd.f32 %v1675_v40, %v1659_v41  ;;  %v1673_v61 = vmul.f32 0.4, %v1473_v9 }
 0x685   :  { %1707 = vst [vmem:[#allocation13 + $0x78] sm:$0xff] %v1691_v11  ;;  %v1689_v50 = vadd.f32 %v1673_v61, %v1657_v55 }
 0x687   :  { %1705 = vst [vmem:[#allocation13 + $0x68] sm:$0xff] %v1689_v50 }
 0x688   :  { %2381 = shalt.err (!%p2378_p6)
}
 0x689   :  { %1719 = dma.vmem_to_hbm [thread:$0]  %s1714_s9, 2048, %s2907_s10, [#allocation4], %s2401_s16, %s2401_s16, %s2402_s17  }
 0x68a   :  { %2398 = dma.done.wait [#allocation4], 2048  }
 0x68b   :  { %2399 = vsyncadd [#allocation4], 4294965248 }
 0x68c   :  { %1723 = vsyncpa [#allocation3], 1 }
 0x68d   :  { %1724 = vsyncpa [#allocation6], 1 }
 0x68e   :  { %1725 = vsyncpa [#allocation9], 1 }
 0x68f   :  { %1726 = vsyncpa [#allocation12], 1 }
 0x690   :  { %1727 = vsyncpa [#allocation4], 1 }

</bundles_post_ra>
